<compile_context>
chip_gen: v6e
topology: v6e:2x2x1
jax: 0.10.0
libtpu: 0.0.40
codegen_flags: <defaults>
</compile_context>

<pallas_src>
import functools
import math

import jax
import jax.numpy as jnp
from jax.experimental import pallas as pl
from jax.experimental.pallas import tpu as pltpu


# ----------------------------------------------------------------------------
# Kernel 1: patch-embed GEMM + cls/pos additive base + pre-LayerNorm (runs once)
# ----------------------------------------------------------------------------
def embed_kernel(pp_ref, pw_ref, base_ref, gw_ref, gb_ref, out_ref, *, eps=1e-5):
    B, S_pad, K = pp_ref.shape
    D = pw_ref.shape[1]
    pp = pp_ref[...].reshape(B * S_pad, K)
    emb = jnp.dot(pp, pw_ref[...], preferred_element_type=jnp.float32)
    # base is (S_pad, D): broadcasts over the batch dim here (no tiling in HBM)
    seq = emb.reshape(B, S_pad, D) + base_ref[...]
    mu = jnp.mean(seq, axis=-1, keepdims=True)
    xc = seq - mu
    var = jnp.mean(xc * xc, axis=-1, keepdims=True)
    out_ref[...] = xc * jax.lax.rsqrt(var + eps) * gw_ref[...] + gb_ref[...]


# ----------------------------------------------------------------------------
# Kernel 2: all encoder layers, activation resident in VMEM scratch.
# grid = (batch_chunks, num_layers); chunk axis "parallel", layer axis
# "arbitrary" (carries the residual stream in x_scr).
# ----------------------------------------------------------------------------
def encoder_kernel(
    x0_ref,
    ln1w_ref, ln1b_ref, wqkv_ref, bqkv_ref, wo_ref, bo_ref,
    ln2w_ref, ln2b_ref, w1_ref, b1_ref, w2_ref, b2_ref,
    out_ref, x_scr,
    *, b_chunk, seq_pad, seq_len, num_heads, eps=1e-5,
):
    l = pl.program_id(1)
    D = wo_ref.shape[-1]
    H = num_heads
    dh = D // H
    Rc = b_chunk * seq_pad
    scale = 1.0 / math.sqrt(dh)

    def layer_norm(v, w, b):
        mu = jnp.mean(v, axis=-1, keepdims=True)
        vc = v - mu
        var = jnp.mean(vc * vc, axis=-1, keepdims=True)
        return vc * jax.lax.rsqrt(var + eps) * w + b

    def split_heads(t):                      # (Rc, D) -> (b*H, S_pad, dh)
        t = t.reshape(b_chunk, seq_pad, D)
        return jnp.concatenate(
            [t[:, :, h * dh:(h + 1) * dh] for h in range(H)], axis=0)

    def merge_heads(t):                      # (b*H, S_pad, dh) -> (Rc, D)
        parts = [t[h * b_chunk:(h + 1) * b_chunk] for h in range(H)]
        return jnp.concatenate(parts, axis=-1).reshape(Rc, D)

    # first layer of this batch chunk: pull the embedded activation into VMEM
    @pl.when(l == 0)
    def _load():
        x_scr[...] = x0_ref[...].reshape(Rc, D)

    x = x_scr[...]                           # f32 residual stream (VMEM-resident)

    # ---- attention block:  x = x + MHA(LN1(x)) ------------------------------
    wqkv = wqkv_ref[0]                       # (3, D, D)  bf16
    bqkv = bqkv_ref[0]                       # (3, 1, D)  f32
    xn = layer_norm(x, ln1w_ref[0], ln1b_ref[0]).astype(jnp.bfloat16)
    q = jnp.dot(xn, wqkv[0], preferred_element_type=jnp.float32) + bqkv[0]
    k = jnp.dot(xn, wqkv[1], preferred_element_type=jnp.float32) + bqkv[1]
    v = jnp.dot(xn, wqkv[2], preferred_element_type=jnp.float32) + bqkv[2]

    qh = split_heads(q * scale).astype(jnp.bfloat16)     # (b*H, S_pad, dh)
    kh = split_heads(k).astype(jnp.bfloat16)
    vh = split_heads(v).astype(jnp.bfloat16)

    # single batched score / PV einsums over the (b*H) batch dim
    s = jnp.einsum('nqd,nkd->nqk', qh, kh, preferred_element_type=jnp.float32)
    kidx = jax.lax.broadcasted_iota(jnp.int32, (1, 1, seq_pad), 2)
    s = jnp.where(kidx < seq_len, s, -1e30)              # mask padded key slots
    s = s - jnp.max(s, axis=-1, keepdims=True)
    p = jnp.exp(s)
    p = p / jnp.sum(p, axis=-1, keepdims=True)           # exact softmax (f32)

    o = jnp.einsum('nqk,nkd->nqd', p.astype(jnp.bfloat16), vh,
                   preferred_element_type=jnp.float32)
    # one full-K output projection (no per-head wo accumulation)
    attn = jnp.dot(merge_heads(o).astype(jnp.bfloat16), wo_ref[0],
                   preferred_element_type=jnp.float32) + bo_ref[0]
    x = x + attn

    # ---- MLP block:  x = x + W2 relu(W1 LN2(x) + b1) + b2 --------------------
    xn2 = layer_norm(x, ln2w_ref[0], ln2b_ref[0]).astype(jnp.bfloat16)
    h1 = jnp.dot(xn2, w1_ref[0], preferred_element_type=jnp.float32) + b1_ref[0]
    h1 = jnp.maximum(h1, 0.0).astype(jnp.bfloat16)
    x = x + jnp.dot(h1, w2_ref[0], preferred_element_type=jnp.float32) + b2_ref[0]
    x_scr[...] = x

    # ---- last layer: emit this chunk's CLS tokens ----------------------------
    @pl.when(l == pl.num_programs(1) - 1)
    def _finalize():
        cls = x.reshape(b_chunk, seq_pad, D)[:, 0, :]     # row 0 of every element
        out_ref[...] = cls.reshape(1, b_chunk, D)


# ----------------------------------------------------------------------------
# Wrapper
# ----------------------------------------------------------------------------
def vit_forward(x, params, *, patch_size, num_heads, batch_chunks=2):
    B, C, Himg, Wimg = x.shape
    p = patch_size
    Hp, Wp = Himg // p, Wimg // p
    N = Hp * Wp
    S = N + 1
    K = C * p * p
    D = params["patch_w"].shape[1]
    L = params["wqkv"].shape[0]
    mlp = params["w1"].shape[2]
    S_pad = ((S + 7) // 8) * 8               # pad seq to full sublanes (17 -> 24)

    # --- JAX glue: conv-as-matmul patch extraction (c,kh,kw ordering) --------
    patches = x.reshape(B, C, Hp, p, Wp, p).transpose(0, 2, 4, 1, 3, 5)
    patches = patches.reshape(B, N, K)
    # slot 0 = cls (zero patch -> no conv contribution), 1..N = patches, rest pad
    pp = jnp.zeros((B, S_pad, K), jnp.float32).at[:, 1:N + 1, :].set(patches)

    # additive per-slot base, kept at (S_pad, D) and broadcast in-kernel
    base = jnp.zeros((S_pad, D), jnp.float32)
    base = base.at[0, :].set(params["cls_tok"][0] + params["pos_emb"][0])
    base = base.at[1:S, :].set(params["patch_b"][0] + params["pos_emb"][1:S])

    # --- pallas_call 1: patch embed + cls/pos + pre-LN (one shot) ------------
    x0 = pl.pallas_call(
        embed_kernel,
        out_shape=jax.ShapeDtypeStruct((B, S_pad, D), jnp.float32),
        grid=(1,),
        in_specs=[
            pl.BlockSpec((B, S_pad, K), lambda i: (0, 0, 0)),
            pl.BlockSpec((K, D), lambda i: (0, 0)),
            pl.BlockSpec((S_pad, D), lambda i: (0, 0)),
            pl.BlockSpec((1, D), lambda i: (0, 0)),
            pl.BlockSpec((1, D), lambda i: (0, 0)),
        ],
        out_specs=pl.BlockSpec((B, S_pad, D), lambda i: (0, 0, 0)),
    )(pp, params["patch_w"], base, params["pre_ln_w"], params["pre_ln_b"])

    # --- pallas_call 2: fused encoder stack -----------------------------------
    num_chunks = batch_chunks if (batch_chunks >= 1 and B % batch_chunks == 0) else 1
    b_chunk = B // num_chunks

    kernel = functools.partial(
        encoder_kernel, b_chunk=b_chunk, seq_pad=S_pad, seq_len=S,
        num_heads=num_heads)

    per_layer = lambda shape: pl.BlockSpec(
        (1,) + shape, lambda c, l: (l,) + (0,) * len(shape))

    out = pl.pallas_call(
        kernel,
        out_shape=jax.ShapeDtypeStruct((num_chunks, b_chunk, D), jnp.float32),
        grid=(num_chunks, L),
        in_specs=[
            # embedded activation: one block per batch chunk (fetched at l==0)
            pl.BlockSpec((b_chunk, S_pad, D), lambda c, l: (c, 0, 0)),
            per_layer((1, D)), per_layer((1, D)),            # LN1
            per_layer((3, D, D)), per_layer((3, 1, D)),      # q/k/v proj (bf16 W)
            per_layer((D, D)), per_layer((1, D)),            # out proj  (bf16 W)
            per_layer((1, D)), per_layer((1, D)),            # LN2
            per_layer((D, mlp)), per_layer((1, mlp)),        # MLP linear1 (bf16 W)
            per_layer((mlp, D)), per_layer((1, D)),          # MLP linear2 (bf16 W)
        ],
        out_specs=pl.BlockSpec((1, b_chunk, D), lambda c, l: (c, 0, 0)),
        scratch_shapes=[pltpu.VMEM((b_chunk * S_pad, D), jnp.float32)],
        compiler_params=pltpu.CompilerParams(
            # chunk axis parallel (v7x megacore), layer axis carries the scratch
            dimension_semantics=("parallel", "arbitrary"),
            vmem_limit_bytes=32 * 1024 * 1024),
    )(x0,
      params["ln1_w"], params["ln1_b"], params["wqkv"], params["bqkv"],
      params["wo"], params["bo"], params["ln2_w"], params["ln2_b"],
      params["w1"], params["b1"], params["w2"], params["b2"])
    return out.reshape(B, D)


# ----------------------------------------------------------------------------
# Parameter init (deterministic xavier-uniform style; per-layer weights stacked,
# matmul weights stored in bf16, biases / LN params in f32)
# ----------------------------------------------------------------------------
def init_params(key, *, patch_size, in_ch, hidden, mlp, num_layers, num_patches):
    K = in_ch * patch_size * patch_size
    S = num_patches + 1
    L = num_layers
    d = hidden

    def xavier(k, shape, fan_in, fan_out):
        bound = math.sqrt(6.0 / (fan_in + fan_out))
        return jax.random.uniform(k, shape, jnp.float32, -bound, bound)

    ks = jax.random.split(key, 7)
    return {
        # conv weight stored pre-reshaped as (C*p*p, D)
        "patch_w": xavier(ks[0], (K, d), K, d),
        "patch_b": jnp.zeros((1, d), jnp.float32),
        "pos_emb": xavier(ks[1], (S, d), S, d),
        "cls_tok": xavier(ks[2], (1, d), 1, d),
        "pre_ln_w": jnp.ones((1, d), jnp.float32),
        "pre_ln_b": jnp.zeros((1, d), jnp.float32),
        # per-layer weights stacked on a leading layer dim
        "ln1_w": jnp.ones((L, 1, d), jnp.float32),
        "ln1_b": jnp.zeros((L, 1, d), jnp.float32),
        "wqkv": xavier(ks[3], (L, 3, d, d), d, 3 * d).astype(jnp.bfloat16),
        "bqkv": jnp.zeros((L, 3, 1, d), jnp.float32),
        "wo": xavier(ks[4], (L, d, d), d, d).astype(jnp.bfloat16),
        "bo": jnp.zeros((L, 1, d), jnp.float32),
        "ln2_w": jnp.ones((L, 1, d), jnp.float32),
        "ln2_b": jnp.zeros((L, 1, d), jnp.float32),
        "w1": xavier(ks[5], (L, d, mlp), d, mlp).astype(jnp.bfloat16),
        "b1": jnp.zeros((L, 1, mlp), jnp.float32),
        "w2": xavier(ks[6], (L, mlp, d), mlp, d).astype(jnp.bfloat16),
        "b2": jnp.zeros((L, 1, d), jnp.float32),
    }


# ----------------------------------------------------------------------------
# Main
# ----------------------------------------------------------------------------
if __name__ == "__main__":
    IMAGE_SIZE = 16
    PATCH_SIZE = 4
    NUM_LAYERS = 2
    NUM_HEADS = 4
    HIDDEN = 32
    MLP_DIM = 64
    BATCH = 2
    IN_CH = 3                                    # module hard-codes 3 channels
    NUM_PATCHES = (IMAGE_SIZE // PATCH_SIZE) ** 2    # 16 -> seq len 17

    key = jax.random.PRNGKey(0)
    k_x, k_p = jax.random.split(key)
    x = jax.random.normal(k_x, (BATCH, IN_CH, IMAGE_SIZE, IMAGE_SIZE), jnp.float32)

    params = init_params(
        k_p, patch_size=PATCH_SIZE, in_ch=IN_CH, hidden=HIDDEN,
        mlp=MLP_DIM, num_layers=NUM_LAYERS, num_patches=NUM_PATCHES)

    fwd = jax.jit(functools.partial(
        vit_forward, patch_size=PATCH_SIZE, num_heads=NUM_HEADS))
    out = jax.block_until_ready(fwd(x, params))

    assert out.shape == (BATCH, HIDDEN)
    assert bool(jnp.all(jnp.isfinite(out)))
    print("KERNEL_OK")
</pallas_src>

<mosaic_0001>
module attributes {stable_mosaic.version = 11 : i64} {
  func.func @embed_kernel(%arg0: i32, %arg1: memref<2x24x48xf32, #tpu.memory_space<vmem>>, %arg2: memref<48x32xf32, #tpu.memory_space<vmem>>, %arg3: memref<24x32xf32, #tpu.memory_space<vmem>>, %arg4: memref<1x32xf32, #tpu.memory_space<vmem>>, %arg5: memref<1x32xf32, #tpu.memory_space<vmem>>, %arg6: memref<2x24x32xf32, #tpu.memory_space<vmem>>) attributes {dimension_semantics = [#tpu.dimension_semantics<arbitrary>], iteration_bounds = array<i64: 1>, scalar_prefetch = 0 : i64, scratch_operands = 0 : i64, tpu.core_type = #tpu.core_type<tc>, window_params = [{pipeline_mode = #tpu.pipeline_mode<synchronous>, transform_indices = @transform_0, window_bounds = array<i64: 2, 24, 48>}, {pipeline_mode = #tpu.pipeline_mode<synchronous>, transform_indices = @transform_1, window_bounds = array<i64: 48, 32>}, {pipeline_mode = #tpu.pipeline_mode<synchronous>, transform_indices = @transform_2, window_bounds = array<i64: 24, 32>}, {pipeline_mode = #tpu.pipeline_mode<synchronous>, transform_indices = @transform_3, window_bounds = array<i64: 1, 32>}, {pipeline_mode = #tpu.pipeline_mode<synchronous>, transform_indices = @transform_4, window_bounds = array<i64: 1, 32>}, {pipeline_mode = #tpu.pipeline_mode<synchronous>, transform_indices = @transform_5, window_bounds = array<i64: 2, 24, 32>}]} {
    %c0 = arith.constant 0 : index
    %c0_0 = arith.constant 0 : index
    %c0_1 = arith.constant 0 : index
    %0 = vector.load %arg1[%c0, %c0_0, %c0_1] : memref<2x24x48xf32, #tpu.memory_space<vmem>>, vector<2x24x48xf32>
    %1 = vector.shape_cast %0 : vector<2x24x48xf32> to vector<48x48xf32>
    %c0_2 = arith.constant 0 : index
    %c0_3 = arith.constant 0 : index
    %2 = vector.load %arg2[%c0_2, %c0_3] : memref<48x32xf32, #tpu.memory_space<vmem>>, vector<48x32xf32>
    %cst = arith.constant dense<0.000000e+00> : vector<48x32xf32>
    %3 = tpu.matmul %1, %2, %cst {dimension_numbers = #tpu.dot_dimension_numbers<[1], [0], [0], [1], [0, 0, 1, 1], [], []>} : vector<48x48xf32>, vector<48x32xf32>, vector<48x32xf32> -> vector<48x32xf32>
    %4 = vector.shape_cast %3 : vector<48x32xf32> to vector<2x24x32xf32>
    %c0_4 = arith.constant 0 : index
    %c0_5 = arith.constant 0 : index
    %5 = vector.load %arg3[%c0_4, %c0_5] : memref<24x32xf32, #tpu.memory_space<vmem>>, vector<24x32xf32>
    %6 = vector.shape_cast %5 : vector<24x32xf32> to vector<1x24x32xf32>
    %7 = vector.broadcast %6 : vector<1x24x32xf32> to vector<2x24x32xf32>
    %8 = arith.addf %4, %7 : vector<2x24x32xf32>
    %cst_6 = arith.constant dense<0.000000e+00> : vector<2x24xf32>
    %9 = vector.multi_reduction <add>, %8, %cst_6 [2] : vector<2x24x32xf32> to vector<2x24xf32>
    %10 = vector.shape_cast %9 : vector<2x24xf32> to vector<2x24x1xf32>
    %cst_7 = arith.constant 3.200000e+01 : f32
    %11 = vector.broadcast %cst_7 : f32 to vector<2x24x1xf32>
    %12 = arith.divf %10, %11 : vector<2x24x1xf32>
    %13 = vector.broadcast %12 : vector<2x24x1xf32> to vector<2x24x32xf32>
    %14 = arith.subf %8, %13 : vector<2x24x32xf32>
    %15 = arith.mulf %14, %14 : vector<2x24x32xf32>
    %cst_8 = arith.constant dense<0.000000e+00> : vector<2x24xf32>
    %16 = vector.multi_reduction <add>, %15, %cst_8 [2] : vector<2x24x32xf32> to vector<2x24xf32>
    %17 = vector.shape_cast %16 : vector<2x24xf32> to vector<2x24x1xf32>
    %cst_9 = arith.constant 3.200000e+01 : f32
    %18 = vector.broadcast %cst_9 : f32 to vector<2x24x1xf32>
    %19 = arith.divf %17, %18 : vector<2x24x1xf32>
    %cst_10 = arith.constant 9.99999974E-6 : f32
    %20 = vector.broadcast %cst_10 : f32 to vector<2x24x1xf32>
    %21 = arith.addf %19, %20 : vector<2x24x1xf32>
    %22 = math.rsqrt %21 : vector<2x24x1xf32>
    %23 = vector.broadcast %22 : vector<2x24x1xf32> to vector<2x24x32xf32>
    %24 = arith.mulf %14, %23 : vector<2x24x32xf32>
    %c0_11 = arith.constant 0 : index
    %c0_12 = arith.constant 0 : index
    %25 = vector.load %arg4[%c0_11, %c0_12] : memref<1x32xf32, #tpu.memory_space<vmem>>, vector<1x32xf32>
    %26 = vector.shape_cast %25 : vector<1x32xf32> to vector<1x1x32xf32>
    %27 = vector.broadcast %26 : vector<1x1x32xf32> to vector<2x24x32xf32>
    %28 = arith.mulf %24, %27 : vector<2x24x32xf32>
    %c0_13 = arith.constant 0 : index
    %c0_14 = arith.constant 0 : index
    %29 = vector.load %arg5[%c0_13, %c0_14] : memref<1x32xf32, #tpu.memory_space<vmem>>, vector<1x32xf32>
    %30 = vector.shape_cast %29 : vector<1x32xf32> to vector<1x1x32xf32>
    %31 = vector.broadcast %30 : vector<1x1x32xf32> to vector<2x24x32xf32>
    %32 = arith.addf %28, %31 : vector<2x24x32xf32>
    %c0_15 = arith.constant 0 : index
    %c0_16 = arith.constant 0 : index
    %c0_17 = arith.constant 0 : index
    %33 = vector.load %arg6[%c0_15, %c0_16, %c0_17] : memref<2x24x32xf32, #tpu.memory_space<vmem>>, vector<2x24x32xf32>
    tpu.vector_store %arg6[%c0_15, %c0_16, %c0_17], %32 {strides = array<i32>} : memref<2x24x32xf32, #tpu.memory_space<vmem>>, vector<2x24x32xf32>,
    return
  }
  func.func @transform_0(%arg0: i32) -> (i32, i32, i32) {
    %c0_i32 = arith.constant 0 : i32
    %c0_i32_0 = arith.constant 0 : i32
    %c0_i32_1 = arith.constant 0 : i32
    %c0_i32_2 = arith.constant 0 : i32
    return %c0_i32, %c0_i32_0, %c0_i32_1 : i32, i32, i32
  }
  func.func @transform_1(%arg0: i32) -> (i32, i32) {
    %c0_i32 = arith.constant 0 : i32
    %c0_i32_0 = arith.constant 0 : i32
    %c0_i32_1 = arith.constant 0 : i32
    return %c0_i32, %c0_i32_0 : i32, i32
  }
  func.func @transform_2(%arg0: i32) -> (i32, i32) {
    %c0_i32 = arith.constant 0 : i32
    %c0_i32_0 = arith.constant 0 : i32
    %c0_i32_1 = arith.constant 0 : i32
    return %c0_i32, %c0_i32_0 : i32, i32
  }
  func.func @transform_3(%arg0: i32) -> (i32, i32) {
    %c0_i32 = arith.constant 0 : i32
    %c0_i32_0 = arith.constant 0 : i32
    %c0_i32_1 = arith.constant 0 : i32
    return %c0_i32, %c0_i32_0 : i32, i32
  }
  func.func @transform_4(%arg0: i32) -> (i32, i32) {
    %c0_i32 = arith.constant 0 : i32
    %c0_i32_0 = arith.constant 0 : i32
    %c0_i32_1 = arith.constant 0 : i32
    return %c0_i32, %c0_i32_0 : i32, i32
  }
  func.func @transform_5(%arg0: i32) -> (i32, i32, i32) {
    %c0_i32 = arith.constant 0 : i32
    %c0_i32_0 = arith.constant 0 : i32
    %c0_i32_1 = arith.constant 0 : i32
    %c0_i32_2 = arith.constant 0 : i32
    return %c0_i32, %c0_i32_0, %c0_i32_1 : i32, i32, i32
  }
}

module attributes {stable_mosaic.version = 11 : i64} {
  func.func @encoder_kernel(%arg0: i32, %arg1: i32, %arg2: memref<1x24x32xf32, #tpu.memory_space<vmem>>, %arg3: memref<1x1x32xf32, #tpu.memory_space<vmem>>, %arg4: memref<1x1x32xf32, #tpu.memory_space<vmem>>, %arg5: memref<1x3x32x32xbf16, #tpu.memory_space<vmem>>, %arg6: memref<1x3x1x32xf32, #tpu.memory_space<vmem>>, %arg7: memref<1x32x32xbf16, #tpu.memory_space<vmem>>, %arg8: memref<1x1x32xf32, #tpu.memory_space<vmem>>, %arg9: memref<1x1x32xf32, #tpu.memory_space<vmem>>, %arg10: memref<1x1x32xf32, #tpu.memory_space<vmem>>, %arg11: memref<1x32x64xbf16, #tpu.memory_space<vmem>>, %arg12: memref<1x1x64xf32, #tpu.memory_space<vmem>>, %arg13: memref<1x64x32xbf16, #tpu.memory_space<vmem>>, %arg14: memref<1x1x32xf32, #tpu.memory_space<vmem>>, %arg15: memref<1x1x32xf32, #tpu.memory_space<vmem>>, %arg16: memref<24x32xf32, #tpu.memory_space<vmem>>) attributes {dimension_semantics = [#tpu.dimension_semantics<parallel>, #tpu.dimension_semantics<arbitrary>], iteration_bounds = array<i64: 2, 2>, scalar_prefetch = 0 : i64, scratch_operands = 1 : i64, tpu.core_type = #tpu.core_type<tc>, window_params = [{transform_indices = @transform_0, window_bounds = array<i64: 1, 24, 32>}, {transform_indices = @transform_1, window_bounds = array<i64: 1, 1, 32>}, {transform_indices = @transform_2, window_bounds = array<i64: 1, 1, 32>}, {transform_indices = @transform_3, window_bounds = array<i64: 1, 3, 32, 32>}, {transform_indices = @transform_4, window_bounds = array<i64: 1, 3, 1, 32>}, {transform_indices = @transform_5, window_bounds = array<i64: 1, 32, 32>}, {transform_indices = @transform_6, window_bounds = array<i64: 1, 1, 32>}, {transform_indices = @transform_7, window_bounds = array<i64: 1, 1, 32>}, {transform_indices = @transform_8, window_bounds = array<i64: 1, 1, 32>}, {transform_indices = @transform_9, window_bounds = array<i64: 1, 32, 64>}, {transform_indices = @transform_10, window_bounds = array<i64: 1, 1, 64>}, {transform_indices = @transform_11, window_bounds = array<i64: 1, 64, 32>}, {transform_indices = @transform_12, window_bounds = array<i64: 1, 1, 32>}, {transform_indices = @transform_13, window_bounds = array<i64: 1, 1, 32>}]} {
    %c0_i32 = arith.constant 0 : i32
    %0 = arith.cmpi eq, %arg1, %c0_i32 : i32
    %1 = arith.extui %0 : i1 to i32
    %c0_i32_0 = arith.constant 0 : i32
    %2 = arith.cmpi ne, %1, %c0_i32_0 : i32
    scf.if %2 {
      %c0_65 = arith.constant 0 : index
      %c0_66 = arith.constant 0 : index
      %c0_67 = arith.constant 0 : index
      %158 = vector.load %arg2[%c0_65, %c0_66, %c0_67] : memref<1x24x32xf32, #tpu.memory_space<vmem>>, vector<1x24x32xf32>
      %159 = vector.shape_cast %158 : vector<1x24x32xf32> to vector<24x32xf32>
      %c0_68 = arith.constant 0 : index
      %c0_69 = arith.constant 0 : index
      %160 = vector.load %arg16[%c0_68, %c0_69] : memref<24x32xf32, #tpu.memory_space<vmem>>, vector<24x32xf32>
      tpu.vector_store %arg16[%c0_68, %c0_69], %159 {strides = array<i32>} : memref<24x32xf32, #tpu.memory_space<vmem>>, vector<24x32xf32>,
    } else {
    }
    %c0 = arith.constant 0 : index
    %c0_1 = arith.constant 0 : index
    %3 = vector.load %arg16[%c0, %c0_1] : memref<24x32xf32, #tpu.memory_space<vmem>>, vector<24x32xf32>
    %c0_2 = arith.constant 0 : index
    %c0_3 = arith.constant 0 : index
    %c0_4 = arith.constant 0 : index
    %c0_5 = arith.constant 0 : index
    %4 = vector.load %arg5[%c0_2, %c0_3, %c0_4, %c0_5] : memref<1x3x32x32xbf16, #tpu.memory_space<vmem>>, vector<1x3x32x32xbf16>
    %5 = vector.shape_cast %4 : vector<1x3x32x32xbf16> to vector<3x32x32xbf16>
    %c0_6 = arith.constant 0 : index
    %c0_7 = arith.constant 0 : index
    %c0_8 = arith.constant 0 : index
    %c0_9 = arith.constant 0 : index
    %6 = vector.load %arg6[%c0_6, %c0_7, %c0_8, %c0_9] : memref<1x3x1x32xf32, #tpu.memory_space<vmem>>, vector<1x3x1x32xf32>
    %7 = vector.shape_cast %6 : vector<1x3x1x32xf32> to vector<3x1x32xf32>
    %c0_10 = arith.constant 0 : index
    %c0_11 = arith.constant 0 : index
    %c0_12 = arith.constant 0 : index
    %8 = vector.load %arg3[%c0_10, %c0_11, %c0_12] : memref<1x1x32xf32, #tpu.memory_space<vmem>>, vector<1x1x32xf32>
    %9 = vector.shape_cast %8 : vector<1x1x32xf32> to vector<1x32xf32>
    %c0_13 = arith.constant 0 : index
    %c0_14 = arith.constant 0 : index
    %c0_15 = arith.constant 0 : index
    %10 = vector.load %arg4[%c0_13, %c0_14, %c0_15] : memref<1x1x32xf32, #tpu.memory_space<vmem>>, vector<1x1x32xf32>
    %11 = vector.shape_cast %10 : vector<1x1x32xf32> to vector<1x32xf32>
    %cst = arith.constant dense<0.000000e+00> : vector<24xf32>
    %12 = vector.multi_reduction <add>, %3, %cst [1] : vector<24x32xf32> to vector<24xf32>
    %13 = vector.shape_cast %12 : vector<24xf32> to vector<24x1xf32>
    %cst_16 = arith.constant 3.200000e+01 : f32
    %14 = vector.broadcast %cst_16 : f32 to vector<24x1xf32>
    %15 = arith.divf %13, %14 : vector<24x1xf32>
    %16 = vector.broadcast %15 : vector<24x1xf32> to vector<24x32xf32>
    %17 = arith.subf %3, %16 : vector<24x32xf32>
    %18 = arith.mulf %17, %17 : vector<24x32xf32>
    %cst_17 = arith.constant dense<0.000000e+00> : vector<24xf32>
    %19 = vector.multi_reduction <add>, %18, %cst_17 [1] : vector<24x32xf32> to vector<24xf32>
    %20 = vector.shape_cast %19 : vector<24xf32> to vector<24x1xf32>
    %cst_18 = arith.constant 3.200000e+01 : f32
    %21 = vector.broadcast %cst_18 : f32 to vector<24x1xf32>
    %22 = arith.divf %20, %21 : vector<24x1xf32>
    %cst_19 = arith.constant 9.99999974E-6 : f32
    %23 = vector.broadcast %cst_19 : f32 to vector<24x1xf32>
    %24 = arith.addf %22, %23 : vector<24x1xf32>
    %25 = math.rsqrt %24 : vector<24x1xf32>
    %26 = vector.broadcast %25 : vector<24x1xf32> to vector<24x32xf32>
    %27 = arith.mulf %17, %26 : vector<24x32xf32>
    %28 = vector.broadcast %9 : vector<1x32xf32> to vector<24x32xf32>
    %29 = arith.mulf %27, %28 : vector<24x32xf32>
    %30 = vector.broadcast %11 : vector<1x32xf32> to vector<24x32xf32>
    %31 = arith.addf %29, %30 : vector<24x32xf32>
    %32 = arith.truncf %31 : vector<24x32xf32> to vector<24x32xbf16>
    %33 = vector.extract_strided_slice %5 {offsets = [0, 0, 0], sizes = [1, 32, 32], strides = [1, 1, 1]} : vector<3x32x32xbf16> to vector<1x32x32xbf16>
    %34 = vector.shape_cast %33 : vector<1x32x32xbf16> to vector<32x32xbf16>
    %cst_20 = arith.constant dense<0.000000e+00> : vector<24x32xf32>
    %35 = tpu.matmul %32, %34, %cst_20 {dimension_numbers = #tpu.dot_dimension_numbers<[1], [0], [0], [1], [0, 0, 1, 1], [], []>} : vector<24x32xbf16>, vector<32x32xbf16>, vector<24x32xf32> -> vector<24x32xf32>
    %36 = vector.extract_strided_slice %7 {offsets = [0, 0, 0], sizes = [1, 1, 32], strides = [1, 1, 1]} : vector<3x1x32xf32> to vector<1x1x32xf32>
    %37 = vector.shape_cast %36 : vector<1x1x32xf32> to vector<1x32xf32>
    %38 = vector.broadcast %37 : vector<1x32xf32> to vector<24x32xf32>
    %39 = arith.addf %35, %38 : vector<24x32xf32>
    %40 = vector.extract_strided_slice %5 {offsets = [1, 0, 0], sizes = [1, 32, 32], strides = [1, 1, 1]} : vector<3x32x32xbf16> to vector<1x32x32xbf16>
    %41 = vector.shape_cast %40 : vector<1x32x32xbf16> to vector<32x32xbf16>
    %cst_21 = arith.constant dense<0.000000e+00> : vector<24x32xf32>
    %42 = tpu.matmul %32, %41, %cst_21 {dimension_numbers = #tpu.dot_dimension_numbers<[1], [0], [0], [1], [0, 0, 1, 1], [], []>} : vector<24x32xbf16>, vector<32x32xbf16>, vector<24x32xf32> -> vector<24x32xf32>
    %43 = vector.extract_strided_slice %7 {offsets = [1, 0, 0], sizes = [1, 1, 32], strides = [1, 1, 1]} : vector<3x1x32xf32> to vector<1x1x32xf32>
    %44 = vector.shape_cast %43 : vector<1x1x32xf32> to vector<1x32xf32>
    %45 = vector.broadcast %44 : vector<1x32xf32> to vector<24x32xf32>
    %46 = arith.addf %42, %45 : vector<24x32xf32>
    %47 = vector.extract_strided_slice %5 {offsets = [2, 0, 0], sizes = [1, 32, 32], strides = [1, 1, 1]} : vector<3x32x32xbf16> to vector<1x32x32xbf16>
    %48 = vector.shape_cast %47 : vector<1x32x32xbf16> to vector<32x32xbf16>
    %cst_22 = arith.constant dense<0.000000e+00> : vector<24x32xf32>
    %49 = tpu.matmul %32, %48, %cst_22 {dimension_numbers = #tpu.dot_dimension_numbers<[1], [0], [0], [1], [0, 0, 1, 1], [], []>} : vector<24x32xbf16>, vector<32x32xbf16>, vector<24x32xf32> -> vector<24x32xf32>
    %50 = vector.extract_strided_slice %7 {offsets = [2, 0, 0], sizes = [1, 1, 32], strides = [1, 1, 1]} : vector<3x1x32xf32> to vector<1x1x32xf32>
    %51 = vector.shape_cast %50 : vector<1x1x32xf32> to vector<1x32xf32>
    %52 = vector.broadcast %51 : vector<1x32xf32> to vector<24x32xf32>
    %53 = arith.addf %49, %52 : vector<24x32xf32>
    %cst_23 = arith.constant 0.353553385 : f32
    %54 = vector.broadcast %cst_23 : f32 to vector<24x32xf32>
    %55 = arith.mulf %39, %54 : vector<24x32xf32>
    %56 = vector.shape_cast %55 : vector<24x32xf32> to vector<1x24x32xf32>
    %57 = vector.extract_strided_slice %56 {offsets = [0, 0, 0], sizes = [1, 24, 8], strides = [1, 1, 1]} : vector<1x24x32xf32> to vector<1x24x8xf32>
    %58 = vector.extract_strided_slice %56 {offsets = [0, 0, 8], sizes = [1, 24, 8], strides = [1, 1, 1]} : vector<1x24x32xf32> to vector<1x24x8xf32>
    %59 = vector.extract_strided_slice %56 {offsets = [0, 0, 16], sizes = [1, 24, 8], strides = [1, 1, 1]} : vector<1x24x32xf32> to vector<1x24x8xf32>
    %60 = vector.extract_strided_slice %56 {offsets = [0, 0, 24], sizes = [1, 24, 8], strides = [1, 1, 1]} : vector<1x24x32xf32> to vector<1x24x8xf32>
    %61 = tpu.concatenate %57, %58, %59, %60 in 0 : vector<1x24x8xf32>, vector<1x24x8xf32>, vector<1x24x8xf32>, vector<1x24x8xf32> -> vector<4x24x8xf32>
    %62 = arith.truncf %61 : vector<4x24x8xf32> to vector<4x24x8xbf16>
    %63 = vector.shape_cast %46 : vector<24x32xf32> to vector<1x24x32xf32>
    %64 = vector.extract_strided_slice %63 {offsets = [0, 0, 0], sizes = [1, 24, 8], strides = [1, 1, 1]} : vector<1x24x32xf32> to vector<1x24x8xf32>
    %65 = vector.extract_strided_slice %63 {offsets = [0, 0, 8], sizes = [1, 24, 8], strides = [1, 1, 1]} : vector<1x24x32xf32> to vector<1x24x8xf32>
    %66 = vector.extract_strided_slice %63 {offsets = [0, 0, 16], sizes = [1, 24, 8], strides = [1, 1, 1]} : vector<1x24x32xf32> to vector<1x24x8xf32>
    %67 = vector.extract_strided_slice %63 {offsets = [0, 0, 24], sizes = [1, 24, 8], strides = [1, 1, 1]} : vector<1x24x32xf32> to vector<1x24x8xf32>
    %68 = tpu.concatenate %64, %65, %66, %67 in 0 : vector<1x24x8xf32>, vector<1x24x8xf32>, vector<1x24x8xf32>, vector<1x24x8xf32> -> vector<4x24x8xf32>
    %69 = arith.truncf %68 : vector<4x24x8xf32> to vector<4x24x8xbf16>
    %70 = vector.shape_cast %53 : vector<24x32xf32> to vector<1x24x32xf32>
    %71 = vector.extract_strided_slice %70 {offsets = [0, 0, 0], sizes = [1, 24, 8], strides = [1, 1, 1]} : vector<1x24x32xf32> to vector<1x24x8xf32>
    %72 = vector.extract_strided_slice %70 {offsets = [0, 0, 8], sizes = [1, 24, 8], strides = [1, 1, 1]} : vector<1x24x32xf32> to vector<1x24x8xf32>
    %73 = vector.extract_strided_slice %70 {offsets = [0, 0, 16], sizes = [1, 24, 8], strides = [1, 1, 1]} : vector<1x24x32xf32> to vector<1x24x8xf32>
    %74 = vector.extract_strided_slice %70 {offsets = [0, 0, 24], sizes = [1, 24, 8], strides = [1, 1, 1]} : vector<1x24x32xf32> to vector<1x24x8xf32>
    %75 = tpu.concatenate %71, %72, %73, %74 in 0 : vector<1x24x8xf32>, vector<1x24x8xf32>, vector<1x24x8xf32>, vector<1x24x8xf32> -> vector<4x24x8xf32>
    %76 = arith.truncf %75 : vector<4x24x8xf32> to vector<4x24x8xbf16>
    "tpu.trace_start"() <{level = 10 : i32, message = "nqd,nkd->nqk"}> : () -> ()
    %cst_24 = arith.constant dense<0.000000e+00> : vector<4x24x24xf32>
    %77 = tpu.matmul %62, %69, %cst_24 {dimension_numbers = #tpu.dot_dimension_numbers<[2], [2], [1], [1], [0, 0, 0, 1, 1, 1], [0], [0]>} : vector<4x24x8xbf16>, vector<4x24x8xbf16>, vector<4x24x24xf32> -> vector<4x24x24xf32>
    "tpu.trace_stop"() : () -> ()
    %78 = tpu.iota {dimensions = array<i32: 2>} : vector<1x1x24xi32>
    %c17_i32 = arith.constant 17 : i32
    %79 = vector.broadcast %c17_i32 : i32 to vector<1x1x24xi32>
    %80 = arith.cmpi slt, %78, %79 : vector<1x1x24xi32>
    %cst_25 = arith.constant -1.000000e+30 : f32
    %81 = vector.shape_cast %80 : vector<1x1x24xi1> to vector<1x1x24xi1>
    %82 = vector.broadcast %81 : vector<1x1x24xi1> to vector<4x24x24xi1>
    %83 = vector.broadcast %cst_25 : f32 to vector<4x24x24xf32>
    %84 = arith.select %82, %77, %83 : vector<4x24x24xi1>, vector<4x24x24xf32>
    %cst_26 = arith.constant dense<0xFF800000> : vector<4x24xf32>
    %85 = vector.multi_reduction <maximumf>, %84, %cst_26 [2] : vector<4x24x24xf32> to vector<4x24xf32>
    %86 = vector.shape_cast %85 : vector<4x24xf32> to vector<4x24x1xf32>
    %87 = vector.broadcast %86 : vector<4x24x1xf32> to vector<4x24x24xf32>
    %88 = arith.subf %84, %87 : vector<4x24x24xf32>
    %89 = math.exp %88 : vector<4x24x24xf32>
    %cst_27 = arith.constant dense<0.000000e+00> : vector<4x24xf32>
    %90 = vector.multi_reduction <add>, %89, %cst_27 [2] : vector<4x24x24xf32> to vector<4x24xf32>
    %91 = vector.shape_cast %90 : vector<4x24xf32> to vector<4x24x1xf32>
    %92 = vector.broadcast %91 : vector<4x24x1xf32> to vector<4x24x24xf32>
    %93 = arith.divf %89, %92 : vector<4x24x24xf32>
    %94 = arith.truncf %93 : vector<4x24x24xf32> to vector<4x24x24xbf16>
    "tpu.trace_start"() <{level = 10 : i32, message = "nqk,nkd->nqd"}> : () -> ()
    %cst_28 = arith.constant dense<0.000000e+00> : vector<4x24x8xf32>
    %95 = tpu.matmul %94, %76, %cst_28 {dimension_numbers = #tpu.dot_dimension_numbers<[2], [1], [1], [2], [0, 0, 0, 1, 1, 2], [0], [0]>} : vector<4x24x24xbf16>, vector<4x24x8xbf16>, vector<4x24x8xf32> -> vector<4x24x8xf32>
    "tpu.trace_stop"() : () -> ()
    %96 = vector.extract_strided_slice %95 {offsets = [0, 0, 0], sizes = [1, 24, 8], strides = [1, 1, 1]} : vector<4x24x8xf32> to vector<1x24x8xf32>
    %97 = vector.extract_strided_slice %95 {offsets = [1, 0, 0], sizes = [1, 24, 8], strides = [1, 1, 1]} : vector<4x24x8xf32> to vector<1x24x8xf32>
    %98 = vector.extract_strided_slice %95 {offsets = [2, 0, 0], sizes = [1, 24, 8], strides = [1, 1, 1]} : vector<4x24x8xf32> to vector<1x24x8xf32>
    %99 = vector.extract_strided_slice %95 {offsets = [3, 0, 0], sizes = [1, 24, 8], strides = [1, 1, 1]} : vector<4x24x8xf32> to vector<1x24x8xf32>
    %100 = tpu.concatenate %96, %97, %98, %99 in 2 : vector<1x24x8xf32>, vector<1x24x8xf32>, vector<1x24x8xf32>, vector<1x24x8xf32> -> vector<1x24x32xf32>
    %101 = vector.shape_cast %100 : vector<1x24x32xf32> to vector<24x32xf32>
    %102 = arith.truncf %101 : vector<24x32xf32> to vector<24x32xbf16>
    %c0_29 = arith.constant 0 : index
    %c0_30 = arith.constant 0 : index
    %c0_31 = arith.constant 0 : index
    %103 = vector.load %arg7[%c0_29, %c0_30, %c0_31] : memref<1x32x32xbf16, #tpu.memory_space<vmem>>, vector<1x32x32xbf16>
    %104 = vector.shape_cast %103 : vector<1x32x32xbf16> to vector<32x32xbf16>
    %cst_32 = arith.constant dense<0.000000e+00> : vector<24x32xf32>
    %105 = tpu.matmul %102, %104, %cst_32 {dimension_numbers = #tpu.dot_dimension_numbers<[1], [0], [0], [1], [0, 0, 1, 1], [], []>} : vector<24x32xbf16>, vector<32x32xbf16>, vector<24x32xf32> -> vector<24x32xf32>
    %c0_33 = arith.constant 0 : index
    %c0_34 = arith.constant 0 : index
    %c0_35 = arith.constant 0 : index
    %106 = vector.load %arg8[%c0_33, %c0_34, %c0_35] : memref<1x1x32xf32, #tpu.memory_space<vmem>>, vector<1x1x32xf32>
    %107 = vector.shape_cast %106 : vector<1x1x32xf32> to vector<1x32xf32>
    %108 = vector.broadcast %107 : vector<1x32xf32> to vector<24x32xf32>
    %109 = arith.addf %105, %108 : vector<24x32xf32>
    %110 = arith.addf %3, %109 : vector<24x32xf32>
    %c0_36 = arith.constant 0 : index
    %c0_37 = arith.constant 0 : index
    %c0_38 = arith.constant 0 : index
    %111 = vector.load %arg9[%c0_36, %c0_37, %c0_38] : memref<1x1x32xf32, #tpu.memory_space<vmem>>, vector<1x1x32xf32>
    %112 = vector.shape_cast %111 : vector<1x1x32xf32> to vector<1x32xf32>
    %c0_39 = arith.constant 0 : index
    %c0_40 = arith.constant 0 : index
    %c0_41 = arith.constant 0 : index
    %113 = vector.load %arg10[%c0_39, %c0_40, %c0_41] : memref<1x1x32xf32, #tpu.memory_space<vmem>>, vector<1x1x32xf32>
    %114 = vector.shape_cast %113 : vector<1x1x32xf32> to vector<1x32xf32>
    %cst_42 = arith.constant dense<0.000000e+00> : vector<24xf32>
    %115 = vector.multi_reduction <add>, %110, %cst_42 [1] : vector<24x32xf32> to vector<24xf32>
    %116 = vector.shape_cast %115 : vector<24xf32> to vector<24x1xf32>
    %cst_43 = arith.constant 3.200000e+01 : f32
    %117 = vector.broadcast %cst_43 : f32 to vector<24x1xf32>
    %118 = arith.divf %116, %117 : vector<24x1xf32>
    %119 = vector.broadcast %118 : vector<24x1xf32> to vector<24x32xf32>
    %120 = arith.subf %110, %119 : vector<24x32xf32>
    %121 = arith.mulf %120, %120 : vector<24x32xf32>
    %cst_44 = arith.constant dense<0.000000e+00> : vector<24xf32>
    %122 = vector.multi_reduction <add>, %121, %cst_44 [1] : vector<24x32xf32> to vector<24xf32>
    %123 = vector.shape_cast %122 : vector<24xf32> to vector<24x1xf32>
    %cst_45 = arith.constant 3.200000e+01 : f32
    %124 = vector.broadcast %cst_45 : f32 to vector<24x1xf32>
    %125 = arith.divf %123, %124 : vector<24x1xf32>
    %cst_46 = arith.constant 9.99999974E-6 : f32
    %126 = vector.broadcast %cst_46 : f32 to vector<24x1xf32>
    %127 = arith.addf %125, %126 : vector<24x1xf32>
    %128 = math.rsqrt %127 : vector<24x1xf32>
    %129 = vector.broadcast %128 : vector<24x1xf32> to vector<24x32xf32>
    %130 = arith.mulf %120, %129 : vector<24x32xf32>
    %131 = vector.broadcast %112 : vector<1x32xf32> to vector<24x32xf32>
    %132 = arith.mulf %130, %131 : vector<24x32xf32>
    %133 = vector.broadcast %114 : vector<1x32xf32> to vector<24x32xf32>
    %134 = arith.addf %132, %133 : vector<24x32xf32>
    %135 = arith.truncf %134 : vector<24x32xf32> to vector<24x32xbf16>
    %c0_47 = arith.constant 0 : index
    %c0_48 = arith.constant 0 : index
    %c0_49 = arith.constant 0 : index
    %136 = vector.load %arg11[%c0_47, %c0_48, %c0_49] : memref<1x32x64xbf16, #tpu.memory_space<vmem>>, vector<1x32x64xbf16>
    %137 = vector.shape_cast %136 : vector<1x32x64xbf16> to vector<32x64xbf16>
    %cst_50 = arith.constant dense<0.000000e+00> : vector<24x64xf32>
    %138 = tpu.matmul %135, %137, %cst_50 {dimension_numbers = #tpu.dot_dimension_numbers<[1], [0], [0], [1], [0, 0, 1, 1], [], []>} : vector<24x32xbf16>, vector<32x64xbf16>, vector<24x64xf32> -> vector<24x64xf32>
    %c0_51 = arith.constant 0 : index
    %c0_52 = arith.constant 0 : index
    %c0_53 = arith.constant 0 : index
    %139 = vector.load %arg12[%c0_51, %c0_52, %c0_53] : memref<1x1x64xf32, #tpu.memory_space<vmem>>, vector<1x1x64xf32>
    %140 = vector.shape_cast %139 : vector<1x1x64xf32> to vector<1x64xf32>
    %141 = vector.broadcast %140 : vector<1x64xf32> to vector<24x64xf32>
    %142 = arith.addf %138, %141 : vector<24x64xf32>
    %cst_54 = arith.constant 0.000000e+00 : f32
    %143 = vector.broadcast %cst_54 : f32 to vector<24x64xf32>
    %144 = arith.maximumf %142, %143 : vector<24x64xf32>
    %145 = arith.truncf %144 : vector<24x64xf32> to vector<24x64xbf16>
    %c0_55 = arith.constant 0 : index
    %c0_56 = arith.constant 0 : index
    %c0_57 = arith.constant 0 : index
    %146 = vector.load %arg13[%c0_55, %c0_56, %c0_57] : memref<1x64x32xbf16, #tpu.memory_space<vmem>>, vector<1x64x32xbf16>
    %147 = vector.shape_cast %146 : vector<1x64x32xbf16> to vector<64x32xbf16>
    %cst_58 = arith.constant dense<0.000000e+00> : vector<24x32xf32>
    %148 = tpu.matmul %145, %147, %cst_58 {dimension_numbers = #tpu.dot_dimension_numbers<[1], [0], [0], [1], [0, 0, 1, 1], [], []>} : vector<24x64xbf16>, vector<64x32xbf16>, vector<24x32xf32> -> vector<24x32xf32>
    %149 = arith.addf %110, %148 : vector<24x32xf32>
    %c0_59 = arith.constant 0 : index
    %c0_60 = arith.constant 0 : index
    %c0_61 = arith.constant 0 : index
    %150 = vector.load %arg14[%c0_59, %c0_60, %c0_61] : memref<1x1x32xf32, #tpu.memory_space<vmem>>, vector<1x1x32xf32>
    %151 = vector.shape_cast %150 : vector<1x1x32xf32> to vector<1x32xf32>
    %152 = vector.broadcast %151 : vector<1x32xf32> to vector<24x32xf32>
    %153 = arith.addf %149, %152 : vector<24x32xf32>
    %c0_62 = arith.constant 0 : index
    %c0_63 = arith.constant 0 : index
    %154 = vector.load %arg16[%c0_62, %c0_63] : memref<24x32xf32, #tpu.memory_space<vmem>>, vector<24x32xf32>
    tpu.vector_store %arg16[%c0_62, %c0_63], %153 {strides = array<i32>} : memref<24x32xf32, #tpu.memory_space<vmem>>, vector<24x32xf32>,
    %c1_i32 = arith.constant 1 : i32
    %155 = arith.cmpi eq, %arg1, %c1_i32 : i32
    %156 = arith.extui %155 : i1 to i32
    %c0_i32_64 = arith.constant 0 : i32
    %157 = arith.cmpi ne, %156, %c0_i32_64 : i32
    scf.if %157 {
      %158 = vector.shape_cast %153 : vector<24x32xf32> to vector<1x24x32xf32>
      %159 = vector.extract_strided_slice %158 {offsets = [0, 0, 0], sizes = [1, 1, 32], strides = [1, 1, 1]} : vector<1x24x32xf32> to vector<1x1x32xf32>
      %160 = vector.shape_cast %159 : vector<1x1x32xf32> to vector<1x32xf32>
      %161 = vector.shape_cast %160 : vector<1x32xf32> to vector<1x1x32xf32>
      %c0_65 = arith.constant 0 : index
      %c0_66 = arith.constant 0 : index
      %c0_67 = arith.constant 0 : index
      %162 = vector.load %arg15[%c0_65, %c0_66, %c0_67] : memref<1x1x32xf32, #tpu.memory_space<vmem>>, vector<1x1x32xf32>
      tpu.vector_store %arg15[%c0_65, %c0_66, %c0_67], %161 {strides = array<i32>} : memref<1x1x32xf32, #tpu.memory_space<vmem>>, vector<1x1x32xf32>,
    } else {
    }
    return
  }
  func.func @transform_0(%arg0: i32, %arg1: i32) -> (i32, i32, i32) {
    %c0_i32 = arith.constant 0 : i32
    %c0_i32_0 = arith.constant 0 : i32
    %c0_i32_1 = arith.constant 0 : i32
    return %arg0, %c0_i32, %c0_i32_0 : i32, i32, i32
  }
  func.func @transform_1(%arg0: i32, %arg1: i32) -> (i32, i32, i32) {
    %c0_i32 = arith.constant 0 : i32
    %c0_i32_0 = arith.constant 0 : i32
    %c0_i32_1 = arith.constant 0 : i32
    return %arg1, %c0_i32, %c0_i32_0 : i32, i32, i32
  }
  func.func @transform_2(%arg0: i32, %arg1: i32) -> (i32, i32, i32) {
    %c0_i32 = arith.constant 0 : i32
    %c0_i32_0 = arith.constant 0 : i32
    %c0_i32_1 = arith.constant 0 : i32
    return %arg1, %c0_i32, %c0_i32_0 : i32, i32, i32
  }
  func.func @transform_3(%arg0: i32, %arg1: i32) -> (i32, i32, i32, i32) {
    %c0_i32 = arith.constant 0 : i32
    %c0_i32_0 = arith.constant 0 : i32
    %c0_i32_1 = arith.constant 0 : i32
    %c0_i32_2 = arith.constant 0 : i32
    return %arg1, %c0_i32, %c0_i32_0, %c0_i32_1 : i32, i32, i32, i32
  }
  func.func @transform_4(%arg0: i32, %arg1: i32) -> (i32, i32, i32, i32) {
    %c0_i32 = arith.constant 0 : i32
    %c0_i32_0 = arith.constant 0 : i32
    %c0_i32_1 = arith.constant 0 : i32
    %c0_i32_2 = arith.constant 0 : i32
    return %arg1, %c0_i32, %c0_i32_0, %c0_i32_1 : i32, i32, i32, i32
  }
  func.func @transform_5(%arg0: i32, %arg1: i32) -> (i32, i32, i32) {
    %c0_i32 = arith.constant 0 : i32
    %c0_i32_0 = arith.constant 0 : i32
    %c0_i32_1 = arith.constant 0 : i32
    return %arg1, %c0_i32, %c0_i32_0 : i32, i32, i32
  }
  func.func @transform_6(%arg0: i32, %arg1: i32) -> (i32, i32, i32) {
    %c0_i32 = arith.constant 0 : i32
    %c0_i32_0 = arith.constant 0 : i32
    %c0_i32_1 = arith.constant 0 : i32
    return %arg1, %c0_i32, %c0_i32_0 : i32, i32, i32
  }
  func.func @transform_7(%arg0: i32, %arg1: i32) -> (i32, i32, i32) {
    %c0_i32 = arith.constant 0 : i32
    %c0_i32_0 = arith.constant 0 : i32
    %c0_i32_1 = arith.constant 0 : i32
    return %arg1, %c0_i32, %c0_i32_0 : i32, i32, i32
  }
  func.func @transform_8(%arg0: i32, %arg1: i32) -> (i32, i32, i32) {
    %c0_i32 = arith.constant 0 : i32
    %c0_i32_0 = arith.constant 0 : i32
    %c0_i32_1 = arith.constant 0 : i32
    return %arg1, %c0_i32, %c0_i32_0 : i32, i32, i32
  }
  func.func @transform_9(%arg0: i32, %arg1: i32) -> (i32, i32, i32) {
    %c0_i32 = arith.constant 0 : i32
    %c0_i32_0 = arith.constant 0 : i32
    %c0_i32_1 = arith.constant 0 : i32
    return %arg1, %c0_i32, %c0_i32_0 : i32, i32, i32
  }
  func.func @transform_10(%arg0: i32, %arg1: i32) -> (i32, i32, i32) {
    %c0_i32 = arith.constant 0 : i32
    %c0_i32_0 = arith.constant 0 : i32
    %c0_i32_1 = arith.constant 0 : i32
    return %arg1, %c0_i32, %c0_i32_0 : i32, i32, i32
  }
  func.func @transform_11(%arg0: i32, %arg1: i32) -> (i32, i32, i32) {
    %c0_i32 = arith.constant 0 : i32
    %c0_i32_0 = arith.constant 0 : i32
    %c0_i32_1 = arith.constant 0 : i32
    return %arg1, %c0_i32, %c0_i32_0 : i32, i32, i32
  }
  func.func @transform_12(%arg0: i32, %arg1: i32) -> (i32, i32, i32) {
    %c0_i32 = arith.constant 0 : i32
    %c0_i32_0 = arith.constant 0 : i32
    %c0_i32_1 = arith.constant 0 : i32
    return %arg1, %c0_i32, %c0_i32_0 : i32, i32, i32
  }
  func.func @transform_13(%arg0: i32, %arg1: i32) -> (i32, i32, i32) {
    %c0_i32 = arith.constant 0 : i32
    %c0_i32_0 = arith.constant 0 : i32
    %c0_i32_1 = arith.constant 0 : i32
    return %arg0, %c0_i32, %c0_i32_0 : i32, i32, i32
  }
}

</mosaic_0001>

<bundles_post_ra>
// kernel: vit_forward.2
= control target key start
LH: loop header
LB: loop body
LE: loop exit
PB: predicated region body
PF: predicated region fallthrough
CT: control target
= control target key end

     0   :  { %vm32_vm0 = vcmask 392192   ;;  %vm155_vm1 = vcmask 261120   ;;  %s468_s1 = inlined_call_operand.vmem [shape: f32[48,32], index: 1, kind: input, shape index: {}]   ;;  %s469_s0 = inlined_call_operand.vmem [shape: f32[2,24,48], index: 0, kind: input, shape index: {}]   ;;  %s470_s2 = inlined_call_operand.vmem [shape: f32[24,32], index: 2, kind: input, shape index: {}]   ;;  %s471_s3 = inlined_call_operand.vmem [shape: f32[1,32], index: 3, kind: input, shape index: {}]   ;;  %s472_s4 = inlined_call_operand.vmem [shape: f32[1,32], index: 4, kind: input, shape index: {}]   ;;  %s473_s5 = inlined_call_operand.vmem [shape: f32[2,24,32], index: 5, kind: output, shape index: {}]  }
   0x1   :  { %v31_v0 = vld [vmem:[%s468_s1 + $0x28] sm:$0xff]  ;;  %v30_v1 = vld [vmem:[%s468_s1 + $0x20] sm:$0xff]  ;;  %v29_v2 = vld [vmem:[%s468_s1 + $0x18] sm:$0xff] }
   0x2   :  { %291 = vmatprep.subr.mxu0 %v31_v0  ;;  %312 = vmatprep.subr.mxu1 %v31_v0  ;;  %v28_v3 = vld [vmem:[%s468_s1 + $0x10] sm:$0xff]  ;;  %v27_v4 = vld [vmem:[%s468_s1 + $0x8] sm:$0xff]  ;;  %v26_v5 = vld [vmem:[%s468_s1] sm:$0xff] }
   0x3   :  { %292 = vmatpush3.msra.mxu0 %v31_v0  ;;  %318 = vmatpush3.msra.mxu1 %v31_v0  ;;  %v20_v6 = vld [vmem:[%s469_s0] sm:$0xff]  ;;  %v22_v7 = vld [vmem:[%s469_s0 + $0x10] sm:$0xff]  ;;  %v21_v8 = vld [vmem:[%s469_s0 + $0x8] sm:$0xff] }
   0x4   :  { %293 = vmatprep.subr.mxu0 %v30_v1  ;;  %313 = vmatprep.subr.mxu1 %v30_v1  ;;  %v23_v9 = vld [vmem:[%s469_s0 + $0x18] sm:$0xff]  ;;  %v24_v10 = vld [vmem:[%s469_s0 + $0x20] sm:$0xff]  ;;  %v25_v11 = vld [vmem:[%s469_s0 + $0x28] sm:$0xff] }
   0x5   :  { %294 = vmatpush3.msra.mxu0 %v30_v1  ;;  %319 = vmatpush3.msra.mxu1 %v30_v1  ;;  %v147_v12 = vld [vmem:[%s470_s2 + $0x8] sm:$0xff]  ;;  %v146_v13 = vld [vmem:[%s470_s2] sm:$0xff]  ;;  %v148_v16 = vld [vmem:[%s470_s2 + $0x10] sm:$0xff] }
   0x6   :  { %295 = vmatprep.subr.mxu0 %v29_v2  ;;  %314 = vmatprep.subr.mxu1 %v29_v2 }
   0x7   :  { %296 = vmatpush3.msra.mxu0 %v29_v2  ;;  %320 = vmatpush3.msra.mxu1 %v29_v2 }
   0x8   :  { %297 = vmatprep.subr.mxu0 %v28_v3  ;;  %315 = vmatprep.subr.mxu1 %v28_v3 }
   0x9   :  { %298 = vmatpush3.msra.mxu0 %v28_v3  ;;  %321 = vmatpush3.msra.mxu1 %v28_v3 }
   0xa   :  { %299 = vmatprep.subr.mxu0 %v27_v4  ;;  %316 = vmatprep.subr.mxu1 %v27_v4 }
   0xb   :  { %300 = vmatpush3.msra.mxu0 %v27_v4  ;;  %322 = vmatpush3.msra.mxu1 %v27_v4 }
   0xc   :  { %301 = vmatprep.subr.mxu0 %v26_v5  ;;  %317 = vmatprep.subr.mxu1 %v26_v5 }
   0xd   :  { %302 = vmatpush3.msra.mxu0 %v26_v5  ;;  %323 = vmatpush3.msra.mxu1 %v26_v5 }
   0xe   :  { %303 = vmatprep.mubr.msk.f32.mxu0 %vm32_vm0, %v20_v6  ;;  %306 = vmatprep.mubr.msk.f32.mxu1 %vm32_vm0, %v22_v7 }
   0xf   :  { %304 = vmatmul.mubr.msk.f32.vlgmr.msra.gmra.mxu0 %vm32_vm0, %v21_v8  ;;  %307 = vmatmul.mubr.msk.f32.vlgmr.msra.gmra.mxu1 %vm32_vm0, %v23_v9 }
  0x10   :  { %309 = vmatprep.mubr.msk.f32.mxu1 %vm32_vm0, %v24_v10 }
  0x13   :  { %310 = vmatmul.mubr.msk.f32.gmra.mxu1 %vm32_vm0, %v25_v11 }
  0xcf   :  { %v305_v14 = vpop.f32.mrf.mxu0  ;;  %v308_v15 = vpop.f32.mrf.mxu1 }
  0xd0   :  { %v150_v17 = vadd.f32 %v305_v14, %v147_v12  ;;  %v152_v18 = vadd.f32 %v308_v15, %v146_v13 }
  0xd1   :  { %v117_v19 = vpop.f32.mrf.mxu0  ;;  %v127_v20 = vpop.f32.mrf.mxu1 }
  0xd2   :  { %v149_v21 = vadd.f32 %v146_v13, %v117_v19  ;;  %v165_v22 = vsel %vm155_vm1, %v152_v18, 0.0  ;;  %v151_v23 = vadd.f32 %v148_v16, %v127_v20  ;;  %v159_v24 = vsel %vm155_vm1, %v150_v17, 0.0  ;;  %v278_v20 = vld [vmem:[%s472_s4] ss:$0 sm:$0xff] }
  0xd3   :  { %166 = vadd.xlane.f32.xlu1 %v165_v22  ;;  %160 = vadd.xlane.f32.xlu0 %v159_v24  ;;  %v311_v25 = vpop.f32.mrf.mxu1 }
  0xd4   :  { %v154_v26 = vadd.f32 %v311_v25, %v148_v16  ;;  %v162_v27 = vsel %vm155_vm1, %v151_v23, 0.0  ;;  %v156_v30 = vsel %vm155_vm1, %v149_v21, 0.0 }
  0xd5   :  { %v137_v28 = vpop.f32.mrf.mxu1 }
  0xd6   :  { %v153_v29 = vadd.f32 %v147_v12, %v137_v28  ;;  %v171_v31 = vsel %vm155_vm1, %v154_v26, 0.0 }
  0xd7   :  { %163 = vadd.xlane.f32.xlu1 %v162_v27  ;;  %157 = vadd.xlane.f32.xlu0 %v156_v30 }
  0xd8   :  { %v168_v32 = vsel %vm155_vm1, %v153_v29, 0.0 }
  0xdb   :  { %172 = vadd.xlane.f32.xlu1 %v171_v31  ;;  %169 = vadd.xlane.f32.xlu0 %v168_v32 }
 0x15c   :  { %v167_v33 = vpop.xlane.xlu1 %166  ;;  %v161_v34 = vpop.xlane.xlu0 %160 }
 0x15d   :  { %v178_v35 = vmul.f32 0.03125, %v167_v33  ;;  %v176_v36 = vmul.f32 0.03125, %v161_v34 }
 0x15f   :  { %v417_v37 = vsub.f32 %v152_v18, %v178_v35  ;;  %v182_v38 = vsub.f32 %v150_v17, %v176_v36  ;;  %v277_v18 = vld [vmem:[%s471_s3] ss:$0 sm:$0xff] }
 0x160   :  { %v164_v39 = vpop.xlane.xlu1 %163  ;;  %v158_v40 = vpop.xlane.xlu0 %157 }
 0x161   :  { %v177_v41 = vmul.f32 0.03125, %v164_v39  ;;  %v175_v42 = vmul.f32 0.03125, %v158_v40  ;;  %v188_v43 = vmul.f32 %v182_v38, %v182_v38  ;;  %v190_v44 = vmul.f32 %v417_v37, %v417_v37 }
 0x163   :  { %v421_v45 = vsub.f32 %v151_v23, %v177_v41  ;;  %v181_v46 = vsub.f32 %v149_v21, %v175_v42  ;;  %v196_v47 = vsel %vm155_vm1, %v188_v43, 0.0  ;;  %v202_v53 = vsel %vm155_vm1, %v190_v44, 0.0 }
 0x164   :  { %v173_v48 = vpop.xlane.xlu1 %172  ;;  %197 = vadd.xlane.f32.xlu1 %v196_v47  ;;  %v170_v49 = vpop.xlane.xlu0 %169 }
 0x165   :  { %v180_v50 = vmul.f32 0.03125, %v173_v48  ;;  %v179_v51 = vmul.f32 0.03125, %v170_v49  ;;  %v187_v52 = vmul.f32 %v181_v46, %v181_v46  ;;  %v189_v57 = vmul.f32 %v421_v45, %v421_v45 }
 0x167   :  { %v186_v54 = vsub.f32 %v154_v26, %v180_v50  ;;  %v425_v55 = vsub.f32 %v153_v29, %v179_v51  ;;  %v193_v56 = vsel %vm155_vm1, %v187_v52, 0.0  ;;  %v199_v60 = vsel %vm155_vm1, %v189_v57, 0.0 }
 0x168   :  { %203 = vadd.xlane.f32.xlu1 %v202_v53  ;;  %194 = vadd.xlane.f32.xlu0 %v193_v56 }
 0x169   :  { %v192_v58 = vmul.f32 %v186_v54, %v186_v54  ;;  %v191_v61 = vmul.f32 %v425_v55, %v425_v55 }
 0x16b   :  { %v208_v59 = vsel %vm155_vm1, %v192_v58, 0.0  ;;  %v205_v62 = vsel %vm155_vm1, %v191_v61, 0.0 }
 0x16c   :  { %209 = vadd.xlane.f32.xlu1 %v208_v59  ;;  %200 = vadd.xlane.f32.xlu0 %v199_v60 }
 0x170   :  { %206 = vadd.xlane.f32.xlu0 %v205_v62 }
 0x1ed   :  { %v198_v63 = vpop.xlane.xlu1 %197 }
 0x1ee   :  { %v212_v0 = vmul.f32 0.03125, %v198_v63 }
 0x1f0   :  { %v218_v1 = vadd.f32 1e-05, %v212_v0 }
 0x1f1   :  { %v204_v2 = vpop.xlane.xlu1 %203  ;;  %v195_v3 = vpop.xlane.xlu0 %194 }
 0x1f2   :  { %324 = vrsqrt.f32 %v218_v1  ;;  %v214_v4 = vmul.f32 0.03125, %v204_v2  ;;  %v211_v5 = vmul.f32 0.03125, %v195_v3 }
 0x1f4   :  { %v220_v6 = vadd.f32 1e-05, %v214_v4  ;;  %v217_v7 = vadd.f32 1e-05, %v211_v5 }
 0x1f5   :  { %v210_v8 = vpop.xlane.xlu1 %209  ;;  %v201_v9 = vpop.xlane.xlu0 %200 }
 0x1f6   :  { %326 = vrsqrt.f32 %v220_v6  ;;  %v216_v10 = vmul.f32 0.03125, %v210_v8  ;;  %v213_v11 = vmul.f32 0.03125, %v201_v9 }
 0x1f7   :  { %328 = vrsqrt.f32 %v217_v7 }
 0x1f8   :  { %v222_v12 = vadd.f32 1e-05, %v216_v10  ;;  %v219_v13 = vadd.f32 1e-05, %v213_v11 }
 0x1f9   :  { %v207_v14 = vpop.xlane.xlu0 %206 }
 0x1fa   :  { %330 = vrsqrt.f32 %v222_v12  ;;  %v215_v15 = vmul.f32 0.03125, %v207_v14 }
 0x1fb   :  { %332 = vrsqrt.f32 %v219_v13 }
 0x1fc   :  { %v221_v16 = vadd.f32 1e-05, %v215_v15 }
 0x1fe   :  { %334 = vrsqrt.f32 %v221_v16 }
 0x1ff   :  { %v325_v17 = vpop.eup %324 }
 0x200   :  { %v230_v19 = vmul.f32 %v325_v17, %v182_v38 }
 0x202   :  { %v243_v21 = vmul.f32 %v277_v18, %v230_v19 }
 0x203   :  { %v327_v22 = vpop.eup %326 }
 0x204   :  { %v329_v23 = vpop.eup %328  ;;  %v256_v24 = vadd.f32 %v278_v20, %v243_v21  ;;  %v232_v25 = vmul.f32 %v327_v22, %v417_v37 }
 0x205   :  { %v229_v26 = vmul.f32 %v329_v23, %v181_v46 }
 0x206   :  { %262 = vst.msk [vmem:[%s473_s5 + $0x8] sm:$0xff] %vm155_vm1, %v256_v24  ;;  %v245_v27 = vmul.f32 %v277_v18, %v232_v25 }
 0x207   :  { %v331_v28 = vpop.eup %330  ;;  %v242_v29 = vmul.f32 %v277_v18, %v229_v26 }
 0x208   :  { %v333_v30 = vpop.eup %332  ;;  %v258_v31 = vadd.f32 %v278_v20, %v245_v27  ;;  %v234_v32 = vmul.f32 %v331_v28, %v186_v54 }
 0x209   :  { %v255_v33 = vadd.f32 %v278_v20, %v242_v29  ;;  %v231_v34 = vmul.f32 %v333_v30, %v421_v45 }
 0x20a   :  { %264 = vst.msk [vmem:[%s473_s5 + $0x18] sm:$0xff] %vm155_vm1, %v258_v31  ;;  %v247_v35 = vmul.f32 %v277_v18, %v234_v32 }
 0x20b   :  { %v335_v36 = vpop.eup %334  ;;  %261 = vst.msk [vmem:[%s473_s5] sm:$0xff] %vm155_vm1, %v255_v33  ;;  %v244_v37 = vmul.f32 %v277_v18, %v231_v34 }
 0x20c   :  { %v260_v38 = vadd.f32 %v278_v20, %v247_v35  ;;  %v233_v39 = vmul.f32 %v335_v36, %v425_v55 }
 0x20d   :  { %v257_v40 = vadd.f32 %v278_v20, %v244_v37 }
 0x20e   :  { %266 = vst.msk [vmem:[%s473_s5 + $0x28] sm:$0xff] %vm155_vm1, %v260_v38  ;;  %v246_v41 = vmul.f32 %v277_v18, %v233_v39 }
 0x20f   :  { %263 = vst.msk [vmem:[%s473_s5 + $0x10] sm:$0xff] %vm155_vm1, %v257_v40 }
 0x210   :  { %v259_v42 = vadd.f32 %v278_v20, %v246_v41 }
 0x212   :  { %265 = vst.msk [vmem:[%s473_s5 + $0x20] sm:$0xff] %vm155_vm1, %v259_v42 }

// kernel: vit_forward.3
= control target key start
LH: loop header
LB: loop body
LE: loop exit
PB: predicated region body
PF: predicated region fallthrough
CT: control target
= control target key end

     0   :  { %s3414_s0 = inlined_call_operand.vmem [shape: f32[2,24,32], index: 0, kind: input, shape index: {}]   ;;  %s3415_s1 = inlined_call_operand.vmem [shape: f32[2,1,32], index: 1, kind: input, shape index: {}]   ;;  %s3416_s2 = inlined_call_operand.vmem [shape: f32[2,1,32], index: 2, kind: input, shape index: {}]   ;;  %s3417_s3 = inlined_call_operand.vmem [shape: bf16[2,3,32,32], index: 3, kind: input, shape index: {}]   ;;  %s3418_s4 = inlined_call_operand.vmem [shape: f32[2,3,1,32], index: 4, kind: input, shape index: {}]   ;;  %s3419_s5 = inlined_call_operand.vmem [shape: bf16[2,32,32], index: 5, kind: input, shape index: {}]   ;;  %s3420_s6 = inlined_call_operand.vmem [shape: f32[2,1,32], index: 6, kind: input, shape index: {}]   ;;  %s3421_s7 = inlined_call_operand.vmem [shape: f32[2,1,32], index: 7, kind: input, shape index: {}]   ;;  %s3422_s8 = inlined_call_operand.vmem [shape: f32[2,1,32], index: 8, kind: input, shape index: {}]   ;;  %s3423_s9 = inlined_call_operand.vmem [shape: bf16[2,32,64], index: 9, kind: input, shape index: {}]   ;;  %s3424_s10 = inlined_call_operand.vmem [shape: f32[2,1,64], index: 10, kind: input, shape index: {}]   ;;  %s3425_s11 = inlined_call_operand.vmem [shape: bf16[2,64,32], index: 11, kind: input, shape index: {}]   ;;  %s3426_s12 = inlined_call_operand.vmem [shape: f32[2,1,32], index: 12, kind: input, shape index: {}]   ;;  %s3427_s13 = inlined_call_operand.hbm [shape: f32[2,1,32], index: 13, kind: output, shape index: {}]  }
   0x1   :  { %3441 = sst [smem:[#allocation18_spill]] %s3414_s0 }
   0x2   :  { %3442 = sst [smem:[#allocation19_spill]] %s3416_s2 }
   0x3   :  { %3443 = sst [smem:[#allocation20_spill]] %s3417_s3 }
   0x4   :  { %3444 = sst [smem:[#allocation21_spill]] %s3418_s4 }
   0x5   :  { %3445 = sst [smem:[#allocation22_spill]] %s3419_s5 }
   0x6   :  { %3446 = sst [smem:[#allocation23_spill]] %s3427_s13 }
   0x7   :  { %18 = vsyncpa [#allocation4], 0 }
   0x8   :  { %20 = vsyncpa [#allocation4 + $0x1], 0  ;;  %s2926_s25 = smov 0   ;;  %s2928_s26 = smov 0  }
   0x9   :  { %s2930_s27 = smov 0   ;;  %s2932_s28 = smov 0  }
   0xa   :  { %s2934_s29 = smov 0   ;;  %s2936_s30 = smov 0  }
   0xb   :  { %s2938_s14 = smov 0   ;;  %s2940_s15 = smov 0  }
   0xc LB: > { %3447 = sst [smem:[#allocation6_spill]] %s2819_s25  ;;  %s2269_s16 = sadd.s32 4294967295, %s2847_s15   ;;  %s2847_s15 = sphi %s2940_s15, %s26_s15   ;;  %s2843_s14 = sphi %s2938_s14, %s3486_s14   ;;  %s2839_s30 = sphi %s2936_s30, %s3485_s30   ;;  %s2835_s29 = sphi %s2934_s29, %s3484_s29   ;;  %s2831_s28 = sphi %s2932_s28, %s3483_s28   ;;  %s2827_s27 = sphi %s2930_s27, %s3482_s27   ;;  %s2823_s26 = sphi %s2928_s26, %s3488_s26   ;;  %s2819_s25 = sphi %s2926_s25, %s3487_s25  }
   0xd   : > { %3448 = sst [smem:[#allocation7_spill]] %s2827_s27  ;;  %s2270_s17 = sadd.s32 4294967294, %s2847_s15  }
   0xe   : > { %3449 = sst [smem:[#allocation8_spill]] %s2831_s28  ;;  %s35_s18 = sadd.s32 1, %s2839_s30 }
   0xf   : > { %3450 = sst [smem:[#allocation9_spill]] %s2835_s29  ;;  %p36_p0 = scmp.ge.s32.totalorder %s35_s18, 2 }
  0x10   : > { %3451 = sst [smem:[#allocation10_spill]] %s2839_s30  ;;  %s38_s19 = sadd.s32 1, %s2843_s14 }
  0x11   : > { %3452 = sst [smem:[#allocation11_spill]] %s2843_s14  ;;  %p393_p1 = scmp.ne.s32.totalorder %s2827_s27, %s2823_s26 }
  0x12   : > { %3453 = sst [smem:[#allocation12_spill]] %s2847_s15  ;;  %p394_p2 = scmp.eq.s32.totalorder %s2269_s16, 3 }
  0x13   : > { %s3490_s18 = smov (%p36_p0, %s35_s18), 0  ;;  %s3492_s19 = smov (!%p36_p0, %s38_s19), %s2843_s14 }
  0x14   : > { %3454 = sst [smem:[#allocation13_spill]] %s3490_s18  ;;  %p2975_p3 = por %p394_p2, %p393_p1 }
  0x15   : > { %p399_p4 = scmp.ne.s32.totalorder %s2823_s26, %s2819_s25  ;;  %p40_p5 = scmp.ge.s32.totalorder %s3492_s19, 2 }
  0x16   : > { %s3455_s20 = scalar_select %p2975_p3, 1, 0 }
  0x17   : > { %p400_p6 = scmp.eq.s32.totalorder %s2270_s17, 3  ;;  %p2273_p7 = scmp.ge.s32.totalorder %s2847_s15, 1 }
  0x18   : > { %3456 = sst [smem:[#allocation14_spill]] %s3455_s20  ;;  %p507_p8 = scmp.lt.s32.totalorder %s2847_s15, 5 }
  0x19   : > { %s3494_s19 = smov (%p40_p5, %s3492_s19), 0  ;;  %p2985_p9 = por %p400_p6, %p399_p4 }
  0x1a   : > { %3457 = sst [smem:[#allocation15_spill]] %s3494_s19  ;;  %p508_p10 = pnand %p2273_p7, %p507_p8 }
  0x1b   : > { %s3458_s21 = scalar_select %p2985_p9, 1, 0 }
  0x1c   : > { %s380_s22 = ssub.s32 %s2843_s14, %s3494_s19  ;;  %s383_s23 = sadd.s32 1, %s2827_s27 }
  0x1d   : > { %3459 = sst [smem:[#allocation16_spill]] %s3458_s21  ;;  %p381_p11 = scmp.eq.s32.totalorder %s380_s22, 0 }
  0x1e   : > { %511 = sbr.rel (%p508_p10) target bundleno = 2535 (0x9e7), region = 72  ;;  %p595_p12 = scmp.lt.s32.totalorder (!%p508_p10), %s2835_s29, 1 }
  0x1f   : > { %s2993_s24 = scalar_select %p381_p11, %s2827_s27, %s383_s23  }
  0x20   : > { %p600_p13 = scmp.lt.s32.totalorder (!%p508_p10), %s2831_s28, 1  ;;  %s3462_s0 = sld [smem:[#allocation18_spill]] (!%p508_p10) }
  0x21   : > { %3460 = sst [smem:[#allocation17_spill]] %s2993_s24 }
  0x22   : > { %s3463_s3 = sld [smem:[#allocation20_spill]] (!%p508_p10) }
  0x23   : > { %s596_s17 = scalar_select %p595_p12, %s2835_s29, 1 }
  0x24   : > { %s3000_s18 = scalar_select %p600_p13, %s2831_s28, 1 }
  0x25   : > { %s2528_s22 = smul.u32 24, %s596_s17  ;;  %s3464_s5 = sld [smem:[#allocation22_spill]] }
  0x26   : > { %s2529_s15 = smul.u32 48, %s3000_s18  ;;  %s2339_s20 = sshll.u32 %s3000_s18, 4 }
  0x27   : > { %s599_s25 = scalar_lea.vmem %s3462_s0, %s2528_s22  ;;  %s2530_s13 = smul.u32 3, %s3000_s18 }
  0x28   : > { %s3019_s17 = scalar_lea.vmem %s3463_s3, %s2529_s15  ;;  %s3465_s4 = sld [smem:[#allocation21_spill]] }
  0x29   : > { %s628_s3 = scalar_lea.vmem %s3422_s8, %s3000_s18  ;;  %s636_s14 = scalar_lea.vmem %s3424_s10, %s3000_s18 }
  0x2a   : > { %s644_s22 = scalar_lea.vmem %s3426_s12, %s3000_s18  ;;  %s3466_s29 = sand.u32 1, %s2823_s26  }
  0x2b   : > { %s3024_s16 = scalar_lea.vmem %s3464_s5, %s2339_s20  ;;  %s3046_s5 = scalar_lea.vmem %s3423_s9, %s2339_s20 }
  0x2c   : > { %s3064_s15 = scalar_lea.vmem [#allocation3], %s3466_s29  ;;  %s3467_s19 = sld [smem:[#allocation8_spill]] }
  0x2e   : > { %s3029_s24 = scalar_lea.vmem %s3465_s4, %s2530_s13  ;;  %s2341_s4 = sshll.u32 %s3000_s18, 5 }
  0x2f   : > { %s3060_s28 = scalar_lea.vmem %s3425_s11, %s2341_s4 }
  0x32   : > { %p2282_p0 = scmp.ne.s32.totalorder %s3467_s19, 0 }
  0x34   : > { %649 = sbr.rel (%p2282_p0) target bundleno = 60 (0x3c), region = 76 }
  0x39   : > { %v650_v0 = vld [vmem:[%s599_s25] sm:$0xff]  ;;  %vm653_vm0 = vcmask 261120   ;;  %v651_v1 = vld [vmem:[%s599_s25 + $0x8] sm:$0xff]  ;;  %v652_v2 = vld [vmem:[%s599_s25 + $0x10] sm:$0xff] }
  0x3a   : > { %654 = vst.msk [vmem:[#allocation2] sm:$0xff] %vm653_vm0, %v650_v0  ;;  %655 = vst.msk [vmem:[#allocation2 + $0x8] sm:$0xff] %vm653_vm0, %v651_v1 }
  0x3b   : > { %656 = vst.msk [vmem:[#allocation2 + $0x10] sm:$0xff] %vm653_vm0, %v652_v2 }
  0x3c PF: > { %vm677_vm1 = vcmask 261120   ;;  %v2678_v24 = vld [vmem:[%s3019_s17 + $0x8] sm:$0xff]   ;;  %v2679_v25 = vld [vmem:[%s3019_s17 + $0x18] sm:$0xff]   ;;  %v2680_v26 = vld [vmem:[%s3019_s17] sm:$0xff]   ;;  %s3468_s20 = scalar_lea.vmem %s3415_s1, %s3000_s18  ;;  %s3469_s13 = sld [smem:[#allocation19_spill]]  ;;  %vm1059_vm2 = vcmask 64512  }
  0x3d   : > { %v2681_v27 = vld [vmem:[%s3019_s17 + $0x10] sm:$0xff]   ;;  %2400 = vmatprep.subr.bf16.mxu0 %v2678_v24  ;;  %2408 = vmatprep.subr.bf16.mxu1 %v2679_v25  ;;  %v2682_v28 = vld [vmem:[%s3019_s17 + $0x28] sm:$0xff]   ;;  %v2283_v40 = vld [vmem:[%s3468_s20] ss:$0 sm:$0xff]  ;;  %s2850_s21 = smov 104   ;;  %s2851_s0 = smov 112  }
  0x3e   : > { %2401 = vmatpush3.bf16.msra.mxu0 %v2678_v24  ;;  %2409 = vmatpush3.bf16.msra.mxu1 %v2679_v25  ;;  %v2683_v54 = vld [vmem:[%s3019_s17 + $0x20] sm:$0xff]   ;;  %s2849_s17 = smov 120   ;;  %vm1464_vm3 = vcmask 1043456   ;;  %vm1317_vm5 = vcmask 195584   ;;  %s2853_s2 = smov 16   ;;  %vm1726_vm6 = vcmask 130048  }
  0x3f   : > { %2402 = vmatprep.subr.bf16.mxu0 %v2680_v26  ;;  %2410 = vmatprep.subr.bf16.mxu1 %v2681_v27  ;;  %v2290_v55 = vld [vmem:[%s3029_s24 + $0x1] ss:$0 sm:$0xff]  ;;  %v2285_v59 = vld [vmem:[%s3029_s24] ss:$0 sm:$0xff]  ;;  %s2854_s29 = smov 24   ;;  %s3471_s4 = scalar_lea.vmem %s3420_s6, %s3000_s18  ;;  %vm1990_vm7 = vcmask 523264  }
  0x40   : > { %s3472_s20 = scalar_lea.vmem %s3421_s7, %s3000_s18 }
  0x41   : > { %v657_v3 = vld [vmem:[#allocation2] sm:$0xff]  ;;  %v658_v5 = vld [vmem:[#allocation2 + $0x8] sm:$0xff] }
  0x42   : > { %v659_v4 = vld [vmem:[#allocation2 + $0x10] sm:$0xff]  ;;  %v678_v6 = vsel %vm677_vm1, %v657_v3, 0.0  ;;  %v681_v8 = vsel %vm677_vm1, %v658_v5, 0.0  ;;  %2403 = vmatpush3.bf16.msra.mxu0 %v2680_v26  ;;  %2411 = vmatpush3.bf16.msra.mxu1 %v2681_v27  ;;  %s3470_s27 = scalar_lea.vmem %s3469_s13, %s3000_s18  ;;  %s3473_s18 = sld [smem:[#allocation8_spill]] }
  0x43   : > { %v684_v7 = vsel %vm677_vm1, %v659_v4, 0.0  ;;  %679 = vadd.xlane.f32.xlu0 %v678_v6  ;;  %2416 = vmatprep.subr.bf16.mxu0 %v2682_v28  ;;  %v2284_v46 = vld [vmem:[%s3470_s27] ss:$0 sm:$0xff] }
  0x44   : > { %685 = vadd.xlane.f32.xlu1 %v684_v7 }
  0x47   : > { %682 = vadd.xlane.f32.xlu0 %v681_v8 }
  0x48   : > { %p2335_p1 = scmp.ne.s32.totalorder %s3473_s18, 1 }
  0xcc   : > { %v680_v9 = vpop.xlane.xlu0 %679 }
  0xcd   : > { %v686_v10 = vpop.xlane.xlu1 %685  ;;  %v688_v11 = vmul.f32 0.03125, %v680_v9 }
  0xce   : > { %v690_v12 = vmul.f32 0.03125, %v686_v10 }
  0xcf   : > { %v691_v13 = vsub.f32 %v657_v3, %v688_v11 }
  0xd0   : > { %v693_v14 = vsub.f32 %v659_v4, %v690_v12  ;;  %v683_v15 = vpop.xlane.xlu0 %682 }
  0xd1   : > { %v689_v16 = vmul.f32 0.03125, %v683_v15  ;;  %v694_v17 = vmul.f32 %v691_v13, %v691_v13 }
  0xd2   : > { %v696_v18 = vmul.f32 %v693_v14, %v693_v14 }
  0xd3   : > { %v692_v19 = vsub.f32 %v658_v5, %v689_v16  ;;  %v697_v20 = vsel %vm677_vm1, %v694_v17, 0.0 }
  0xd4   : > { %698 = vadd.xlane.f32.xlu1 %v697_v20  ;;  %v703_v21 = vsel %vm677_vm1, %v696_v18, 0.0 }
  0xd5   : > { %v695_v22 = vmul.f32 %v692_v19, %v692_v19 }
  0xd7   : > { %v700_v23 = vsel %vm677_vm1, %v695_v22, 0.0 }
  0xd8   : > { %704 = vadd.xlane.f32.xlu1 %v703_v21  ;;  %701 = vadd.xlane.f32.xlu0 %v700_v23 }
 0x15d   : > { %v699_v29 = vpop.xlane.xlu1 %698 }
 0x15e   : > { %v706_v30 = vmul.f32 0.03125, %v699_v29 }
 0x160   : > { %v709_v31 = vadd.f32 1e-05, %v706_v30 }
 0x161   : > { %v705_v32 = vpop.xlane.xlu1 %704  ;;  %v702_v33 = vpop.xlane.xlu0 %701 }
 0x162   : > { %2692 = vrsqrt.f32 %v709_v31  ;;  %v708_v34 = vmul.f32 0.03125, %v705_v32  ;;  %v707_v35 = vmul.f32 0.03125, %v702_v33 }
 0x164   : > { %v711_v36 = vadd.f32 1e-05, %v708_v34  ;;  %v710_v37 = vadd.f32 1e-05, %v707_v35 }
 0x166   : > { %2694 = vrsqrt.f32 %v711_v36 }
 0x167   : > { %2696 = vrsqrt.f32 %v710_v37 }
 0x16f   : > { %v2693_v38 = vpop.eup %2692 }
 0x170   : > { %v715_v39 = vmul.f32 %v2693_v38, %v691_v13 }
 0x172   : > { %v724_v45 = vmul.f32 %v2283_v40, %v715_v39 }
 0x173   : > { %v2695_v41 = vpop.eup %2694 }
 0x174   : > { %v2697_v42 = vpop.eup %2696  ;;  %v717_v43 = vmul.f32 %v2695_v41, %v693_v14  ;;  %v733_v50 = vadd.f32 %v2284_v46, %v724_v45 }
 0x175   : > { %v716_v44 = vmul.f32 %v2697_v42, %v692_v19 }
 0x176   : > { %v726_v47 = vmul.f32 %v2283_v40, %v717_v43 }
 0x177   : > { %v725_v48 = vmul.f32 %v2283_v40, %v716_v44  ;;  %v2295_v40 = vld [vmem:[%s3029_s24 + $0x2] ss:$0 sm:$0xff]  ;;  %s2852_s24 = smov 8  }
 0x178   : > { %v735_v49 = vadd.f32 %v2284_v46, %v726_v47 }
 0x179   : > { %v734_v51 = vadd.f32 %v2284_v46, %v725_v48 }
 0x17a   : > { %v737_v52 = vpack.c.bf16 %v735_v49, %v735_v49 }
 0x17b   : > { %v736_v53 = vpack.c.bf16 %v734_v51, %v733_v50 }
 0x17d   : > { %2404 = vmatprep.mubr.msk.bf16.mxu0 %vm677_vm1, %v736_v53  ;;  %2412 = vmatprep.mubr.msk.bf16.mxu1 %vm677_vm1, %v736_v53 }
 0x17e   : > { %2405 = vmatmul.mubr.msk.bf16.vlgmr.msra.gmra.mxu0 %vm677_vm1, %v737_v52  ;;  %2413 = vmatmul.mubr.msk.bf16.vlgmr.msra.gmra.mxu1 %vm677_vm1, %v737_v52 }
 0x17f   : > { %2417 = vmatpush3.bf16.msra.mxu0 %v2682_v28  ;;  %2420 = vmatprep.mubr.msk.bf16.mxu0 %vm677_vm1, %v736_v53 }
 0x180   : > { %2418 = vmatprep.subr.bf16.mxu0 %v2683_v54 }
 0x183   : > { %2419 = vmatpush3.bf16.msra.mxu0 %v2683_v54 }
 0x186   : > { %2421 = vmatmul.mubr.msk.bf16.vlgmr.msra.gmra.mxu0 %vm677_vm1, %v737_v52 }
 0x23e   : > { %v2406_v56 = vpop.f32.mrf.mxu0  ;;  %v2414_v57 = vpop.f32.mrf.mxu1 }
 0x23f   : > { %v871_v58 = vadd.f32 %v2414_v57, %v2290_v55  ;;  %v805_v15 = vadd.f32 %v2406_v56, %v2285_v59 }
 0x240   : > { %v796_v60 = vpop.f32.mrf.mxu0  ;;  %v862_v61 = vpop.f32.mrf.mxu1 }
 0x241   : > { %v797_v62 = vadd.f32 %v2285_v59, %v796_v60  ;;  %v863_v63 = vadd.f32 %v2290_v55, %v862_v61  ;;  %v1014_v0 = vpack.c.bf16 %v871_v58, %v871_v58  ;;  %v944_v20 = vmul.f32 0.35355338, %v805_v15 }
 0x242   : > { %v2407_v1 = vpop.f32.mrf.mxu0  ;;  %v2415_v2 = vpop.f32.mrf.mxu1 }
 0x243   : > { %2516 = vmatprep.subr.msk.bf16.mxu1 %vm1059_vm2, %v1014_v0  ;;  %v1070_v3 = vsel %vm1059_vm2, %v1014_v0, 0  ;;  %v2608_v4 = vpack.i.bf16 %v863_v63, %v871_v58  ;;  %v942_v7 = vmul.f32 0.35355338, %v797_v62  ;;  %v976_v23 = vpack.c.bf16 %v944_v20, %v944_v20 }
 0x244   : > { %v799_v5 = vpop.f32.mrf.mxu0  ;;  %v865_v6 = vpop.f32.mrf.mxu1  ;;  %2425 = vmatpush3.bf16.xpose.msra.mxu1 %v1070_v3 }
 0x245   : > { %v800_v8 = vadd.f32 %v2285_v59, %v799_v5  ;;  %v866_v9 = vadd.f32 %v2290_v55, %v865_v6  ;;  %2609 = vrot.lane.b32.xlu0 %v2608_v4, %s2849_s17 }
 0x246   : > { %v2422_v10 = vpop.f32.mrf.mxu0 }
 0x247   : > { %v943_v11 = vmul.f32 0.35355338, %v800_v8  ;;  %v1013_v12 = vpack.c.bf16 %v866_v9, %v863_v63  ;;  %v2613_v13 = vpack.i.bf16 %v942_v7, %v866_v9  ;;  %v2633_v19 = vpack.i.bf16 %v866_v9, %v863_v63 }
 0x248   : > { %v3100_v14 = vpop.f32.mrf.mxu0  ;;  %v3123_v47 = vadd.f32 %v2422_v10, %v2295_v40 }
 0x249   : > { %1008 = vrot.lane.b32.xlu0 %v871_v58, %s2850_s21  ;;  %2517 = vmatprep.subr.msk.bf16.mxu1 %vm1059_vm2, %v1013_v12  ;;  %v975_v16 = vpack.c.bf16 %v943_v11, %v942_v7  ;;  %v1067_v18 = vsel %vm1059_vm2, %v1013_v12, 0  ;;  %v2643_v21 = vpack.i.bf16 %v943_v11, %v942_v7  ;;  %v2623_v22 = vpack.i.bf16 %v944_v20, %v943_v11 }
 0x24a   : > { %2614 = vrot.lane.b32.xlu1 %v2613_v13, %s2849_s17  ;;  %v2423_v17 = vpop.f32.mrf.mxu0  ;;  %v1052_v60 = vpack.c.bf16 %v3123_v47, %v3123_v47  ;;  %v3139_v5 = vadd.f32 %v2295_v40, %v3100_v14  ;;  %v1300_v12 = vlaneseq }
 0x24b   : > { %2428 = vmatprep.mubr.msk.bf16.mxu1 %vm1059_vm2, %v975_v16 }
 0x24c   : > { %2427 = vmatpush3.bf16.xpose.msra.mxu1 %v1067_v18  ;;  %v931_v1 = vpop.f32.mrf.mxu0  ;;  %v1466_v8 = vsel %vm1464_vm3, %v1052_v60, 0 }
 0x24d   : > { %2634 = vrot.lane.b32.xlu0 %v2633_v19, %s2850_s21 }
 0x24e   : > { %2619 = vrot.lane.b32.xlu1 %v2608_v4, %s2851_s0  ;;  %v3135_v4 = vadd.f32 %v2295_v40, %v931_v1 }
 0x250   : > { %v1051_v9 = vpack.c.bf16 %v3135_v4, %v3139_v5 }
 0x251   : > { %2644 = vrot.lane.b32.xlu0 %v2643_v21, %s2850_s21 }
 0x252   : > { %2624 = vrot.lane.b32.xlu1 %v2623_v22, %s2849_s17 }
 0x253   : > { %2429 = vmatmul.mubr.msk.bf16.vlgmr.msra.gmra.mxu1 %vm1059_vm2, %v976_v23 }
 0x256   : > { %2629 = vrot.lane.b32.xlu1 %v2613_v13, %s2851_s0  ;;  %v1301_v13 = vand.u32 127, %v1300_v12 }
 0x258   : > { %vm1302_vm4 = vcmp.lt.s32.totalorder %v1301_v13, 17 }
 0x25a   : > { %2639 = vrot.lane.b32.xlu1 %v2623_v22, %s2851_s0 }
 0x25e   : > { %970 = vrot.lane.b32.xlu1 %v944_v20, %s2850_s21 }
 0x2b7   : > { %v2610_v24 = vpop.permute.xlu0 %2609 }
 0x2b8   : > { %v2611_v25 = vunpack.i.l.bf16 %v2610_v24  ;;  %v2612_v30 = vunpack.i.h.bf16 %v2610_v24 }
 0x2ba   : > { %v1016_v26 = vpack.c.bf16 %v2611_v25, %v2611_v25 }
 0x2bb   : > { %v1009_v27 = vpop.permute.xlu0 %1008 }
 0x2bc   : > { %v2615_v28 = vpop.permute.xlu1 %2614  ;;  %2518 = vmatprep.subr.msk.bf16.mxu0 %vm1059_vm2, %v1016_v26  ;;  %v1130_v29 = vsel %vm1059_vm2, %v1016_v26, 0  ;;  %v1020_v37 = vpack.c.bf16 %v1009_v27, %v1009_v27 }
 0x2bd   : > { %v2616_v31 = vunpack.i.l.bf16 %v2615_v28  ;;  %2433 = vmatpush3.bf16.xpose.msra.mxu0 %v1130_v29  ;;  %v2617_v41 = vunpack.i.h.bf16 %v2615_v28 }
 0x2be   : > { %v1250_v57 = vsel %vm1059_vm2, %v1020_v37, 0 }
 0x2bf   : > { %v1015_v32 = vpack.c.bf16 %v2616_v31, %v2612_v30  ;;  %v2635_v33 = vpop.permute.xlu0 %2634 }
 0x2c0   : > { %v2620_v34 = vpop.permute.xlu1 %2619  ;;  %v2637_v51 = vunpack.i.h.bf16 %v2635_v33  ;;  %v2636_v52 = vunpack.i.l.bf16 %v2635_v33 }
 0x2c1   : > { %v2621_v35 = vunpack.i.l.bf16 %v2620_v34  ;;  %2519 = vmatprep.subr.msk.bf16.mxu0 %vm1059_vm2, %v1015_v32  ;;  %v1127_v39 = vsel %vm1059_vm2, %v1015_v32, 0  ;;  %v2622_v53 = vunpack.i.h.bf16 %v2620_v34 }
 0x2c2   : > { %v1019_v61 = vpack.c.bf16 %v2637_v51, %v2636_v52 }
 0x2c3   : > { %v1018_v36 = vpack.c.bf16 %v2621_v35, %v2621_v35  ;;  %v2645_v42 = vpop.permute.xlu0 %2644 }
 0x2c4   : > { %v2625_v38 = vpop.permute.xlu1 %2624  ;;  %v2647_v48 = vunpack.i.h.bf16 %v2645_v42  ;;  %v2646_v49 = vunpack.i.l.bf16 %v2645_v42  ;;  %v1247_v7 = vsel %vm1059_vm2, %v1019_v61, 0 }
 0x2c5   : > { %v2626_v43 = vunpack.i.l.bf16 %v2625_v38  ;;  %2520 = vmatprep.subr.msk.bf16.mxu1 %vm1059_vm2, %v1018_v36  ;;  %2435 = vmatpush3.bf16.xpose.msra.mxu0 %v1127_v39  ;;  %v1190_v44 = vsel %vm1059_vm2, %v1018_v36, 0  ;;  %v2627_v45 = vunpack.i.h.bf16 %v2625_v38 }
 0x2c6   : > { %2441 = vmatpush3.bf16.xpose.msra.mxu1 %v1190_v44  ;;  %2522 = vmatprep.subr.msk.bf16.mxu0 %vm1059_vm2, %v1020_v37  ;;  %v981_v58 = vpack.c.bf16 %v2647_v48, %v2646_v49 }
 0x2c7   : > { %v977_v46 = vpack.c.bf16 %v2626_v43, %v2617_v41  ;;  %v978_v55 = vpack.c.bf16 %v2627_v45, %v2627_v45 }
 0x2c8   : > { %v2630_v50 = vpop.permute.xlu1 %2629 }
 0x2c9   : > { %v2631_v54 = vunpack.i.l.bf16 %v2630_v50  ;;  %2436 = vmatprep.mubr.msk.bf16.mxu0 %vm1059_vm2, %v977_v46  ;;  %v2632_v62 = vunpack.i.h.bf16 %v2630_v50 }
 0x2cb   : > { %v1017_v56 = vpack.c.bf16 %v2631_v54, %v2622_v53 }
 0x2cc   : > { %v2640_v59 = vpop.permute.xlu1 %2639  ;;  %2437 = vmatmul.mubr.msk.bf16.vlgmr.msra.gmra.mxu0 %vm1059_vm2, %v978_v55  ;;  %v2653_v55 = vpack.i.bf16 %v3139_v5, %v3123_v47 }
 0x2cd   : > { %v2641_v63 = vunpack.i.l.bf16 %v2640_v59  ;;  %2521 = vmatprep.subr.msk.bf16.mxu1 %vm1059_vm2, %v1017_v56  ;;  %v1187_v0 = vsel %vm1059_vm2, %v1017_v56, 0  ;;  %2449 = vmatpush3.bf16.xpose.msra.mxu0 %v1250_v57  ;;  %v2642_v2 = vunpack.i.h.bf16 %v2640_v59 }
 0x2ce   : > { %2443 = vmatpush3.bf16.xpose.msra.mxu1 %v1187_v0  ;;  %2452 = vmatprep.mubr.msk.bf16.mxu0 %vm1059_vm2, %v981_v58 }
 0x2cf   : > { %v979_v3 = vpack.c.bf16 %v2641_v63, %v2632_v62  ;;  %2523 = vmatprep.subr.msk.bf16.mxu0 %vm1059_vm2, %v1019_v61  ;;  %2524 = vmatprep.subr.msk.bf16.mxu1 %vm1464_vm3, %v1052_v60  ;;  %v980_v6 = vpack.c.bf16 %v2642_v2, %v2642_v2 }
 0x2d0   : > { %v971_v10 = vpop.permute.xlu1 %970 }
 0x2d1   : > { %2444 = vmatprep.mubr.msk.bf16.mxu1 %vm1059_vm2, %v979_v3  ;;  %v982_v11 = vpack.c.bf16 %v971_v10, %v971_v10 }
 0x2d5   : > { %2445 = vmatmul.mubr.msk.bf16.vlgmr.msra.gmra.mxu1 %vm1059_vm2, %v980_v6  ;;  %2451 = vmatpush3.bf16.xpose.msra.mxu0 %v1247_v7 }
 0x2d6   : > { %2457 = vmatpush3.bf16.msra.mxu1 %v1466_v8 }
 0x2d7   : > { %2458 = vmatprep.subr.bf16.mxu1 %v1051_v9 }
 0x2da   : > { %2459 = vmatpush3.bf16.msra.mxu1 %v1051_v9 }
 0x2dc   : > { %2453 = vmatmul.mubr.msk.bf16.vlgmr.msra.gmra.mxu0 %vm1059_vm2, %v982_v11 }
 0x313   : > { %v2430_v14 = vpop.f32.mrf.mxu1 }
 0x314   : > { %v1307_v15 = vsel %vm1302_vm4, %v2430_v14, -1e+30 }
 0x315   : > { %v1106_v16 = vpop.f32.mrf.mxu1  ;;  %v1324_v17 = vsel %vm1317_vm5, %v1307_v15, -inf }
 0x316   : > { %v1305_v18 = vsel %vm1302_vm4, %v1106_v16, -1e+30  ;;  %1325 = vmax.xlane.f32.xlu0 %v1324_v17 }
 0x317   : > { %v2431_v19 = vpop.f32.mrf.mxu1  ;;  %v1318_v21 = vsel %vm1317_vm5, %v1305_v18, -inf }
 0x319   : > { %v1109_v20 = vpop.f32.mrf.mxu1 }
 0x31a   : > { %v1306_v22 = vsel %vm1302_vm4, %v1109_v20, -1e+30  ;;  %1319 = vmax.xlane.f32.xlu0 %v1318_v21 }
 0x31b   : > { %v1321_v23 = vsel %vm1317_vm5, %v1306_v22, -inf }
 0x31c   : > { %1322 = vmax.xlane.f32.xlu1 %v1321_v23 }
 0x38c   : > { %v2438_v24 = vpop.f32.mrf.mxu0 }
 0x38d   : > { %v3154_v25 = vsel %vm1302_vm4, %v2438_v24, -1e+30 }
 0x38e   : > { %v1166_v26 = vpop.f32.mrf.mxu0  ;;  %v1333_v27 = vsel %vm1317_vm5, %v3154_v25, -inf }
 0x38f   : > { %v3159_v28 = vsel %vm1302_vm4, %v1166_v26, -1e+30  ;;  %1334 = vmax.xlane.f32.xlu1 %v1333_v27 }
 0x390   : > { %v2439_v29 = vpop.f32.mrf.mxu0  ;;  %v1327_v30 = vsel %vm1317_vm5, %v3159_v28, -inf }
 0x391   : > { %1328 = vmax.xlane.f32.xlu0 %v1327_v30 }
 0x392   : > { %v1169_v32 = vpop.f32.mrf.mxu0 }
 0x393   : > { %v3169_v37 = vsel %vm1302_vm4, %v1169_v32, -1e+30 }
 0x394   : > { %v1330_v41 = vsel %vm1317_vm5, %v3169_v37, -inf }
 0x395   : > { %v2446_v31 = vpop.f32.mrf.mxu1 }
 0x396   : > { %v3176_v43 = vsel %vm1302_vm4, %v2446_v31, -1e+30 }
 0x397   : > { %v1226_v33 = vpop.f32.mrf.mxu1  ;;  %v1342_v49 = vsel %vm1317_vm5, %v3176_v43, -inf }
 0x398   : > { %v3164_v34 = vsel %vm1302_vm4, %v1226_v33, -1e+30 }
 0x399   : > { %v2447_v35 = vpop.f32.mrf.mxu1  ;;  %v1336_v36 = vsel %vm1317_vm5, %v3164_v34, -inf }
 0x39a   : > { %1337 = vmax.xlane.f32.xlu0 %v1336_v36 }
 0x39b   : > { %v1229_v38 = vpop.f32.mrf.mxu1 }
 0x39c   : > { %v1312_v39 = vsel %vm1302_vm4, %v1229_v38, -1e+30  ;;  %v2454_v40 = vpop.f32.mrf.mxu0 }
 0x39d   : > { %v1339_v42 = vsel %vm1317_vm5, %v1312_v39, -inf  ;;  %v3186_v50 = vsel %vm1302_vm4, %v2454_v40, -1e+30 }
 0x39e   : > { %1331 = vmax.xlane.f32.xlu0 %v1330_v41  ;;  %1340 = vmax.xlane.f32.xlu1 %v1339_v42  ;;  %v1286_v44 = vpop.f32.mrf.mxu0  ;;  %v1351_v54 = vsel %vm1317_vm5, %v3186_v50, -inf }
 0x39f   : > { %v3179_v45 = vsel %vm1302_vm4, %v1286_v44, -1e+30  ;;  %v1326_v56 = vpop.xlane.xlu0 %1325 }
 0x3a0   : > { %v2455_v46 = vpop.f32.mrf.mxu0  ;;  %v1345_v48 = vsel %vm1317_vm5, %v3179_v45, -inf  ;;  %v1356_v57 = vsub.f32 %v1307_v15, %v1326_v56 }
 0x3a2   : > { %1343 = vmax.xlane.f32.xlu0 %v1342_v49  ;;  %1346 = vmax.xlane.f32.xlu1 %v1345_v48  ;;  %v1289_v51 = vpop.f32.mrf.mxu0  ;;  %v1370_v59 = vmul.f32 1.442695, %v1356_v57 }
 0x3a3   : > { %v3189_v52 = vsel %vm1302_vm4, %v1289_v51, -1e+30  ;;  %v1320_v58 = vpop.xlane.xlu0 %1319 }
 0x3a4   : > { %v1348_v53 = vsel %vm1317_vm5, %v3189_v52, -inf  ;;  %v1354_v60 = vsub.f32 %v1305_v18, %v1320_v58  ;;  %2698 = vpow2.f32 %v1370_v59 }
 0x3a5   : > { %v1323_v61 = vpop.xlane.xlu1 %1322 }
 0x3a6   : > { %1349 = vmax.xlane.f32.xlu0 %v1348_v53  ;;  %1352 = vmax.xlane.f32.xlu1 %v1351_v54  ;;  %v1366_v62 = vmul.f32 1.442695, %v1354_v60  ;;  %v1355_v63 = vsub.f32 %v1306_v22, %v1323_v61 }
 0x3a8   : > { %2700 = vpow2.f32 %v1366_v62  ;;  %v1368_v0 = vmul.f32 1.442695, %v1355_v63 }
 0x3aa   : > { %2702 = vpow2.f32 %v1368_v0 }
 0x3b1   : > { %v3203_v1 = vpop.eup %2698 }
 0x3b2   : > { %v1396_v2 = vsel %vm1317_vm5, %v3203_v1, 0.0 }
 0x3b5   : > { %v3207_v3 = vpop.eup %2700 }
 0x3b7   : > { %1026 = vrot.lane.b32.xlu1 %v3135_v4, %s2849_s17  ;;  %v3211_v6 = vpop.eup %2702 }
 0x3b8   : > { %v1393_v7 = vsel %vm1317_vm5, %v3211_v6, 0.0 }
 0x3bb   : > { %2654 = vrot.lane.b32.xlu1 %v2653_v55, %s2851_s0 }
 0x3bc   : > { %2649 = vrot.lane.b32.xlu0 %v2653_v55, %s2849_s17 }
 0x3bf   : > { %1046 = vrot.lane.b32.xlu1 %v3123_v47, %s2850_s21  ;;  %v1390_v47 = vsel %vm1317_vm5, %v3207_v3, 0.0 }
 0x3db   : > { %1397 = vadd.xlane.f32.xlu0 %v1396_v2 }
 0x3df   : > { %1391 = vadd.xlane.f32.xlu0 %v1390_v47  ;;  %v2658_v47 = vpack.i.bf16 %v3135_v4, %v3139_v5 }
 0x3e3   : > { %1394 = vadd.xlane.f32.xlu1 %v1393_v7 }
 0x418   : > { %v1335_v8 = vpop.xlane.xlu1 %1334 }
 0x419   : > { %v1359_v9 = vsub.f32 %v3154_v25, %v1335_v8 }
 0x41a   : > { %v1329_v10 = vpop.xlane.xlu0 %1328 }
 0x41b   : > { %v1376_v11 = vmul.f32 1.442695, %v1359_v9  ;;  %v1357_v12 = vsub.f32 %v3159_v28, %v1329_v10 }
 0x41d   : > { %2704 = vpow2.f32 %v1376_v11  ;;  %v1372_v13 = vmul.f32 1.442695, %v1357_v12 }
 0x41f   : > { %2706 = vpow2.f32 %v1372_v13 }
 0x423   : > { %v1338_v14 = vpop.xlane.xlu0 %1337 }
 0x424   : > { %v1360_v19 = vsub.f32 %v3164_v34, %v1338_v14 }
 0x426   : > { %v1378_v26 = vmul.f32 1.442695, %v1360_v19 }
 0x427   : > { %v1332_v15 = vpop.xlane.xlu0 %1331  ;;  %v1341_v16 = vpop.xlane.xlu1 %1340 }
 0x428   : > { %v1361_v17 = vsub.f32 %v1312_v39, %v1341_v16  ;;  %v1358_v27 = vsub.f32 %v3169_v37, %v1332_v15 }
 0x42a   : > { %v3217_v18 = vpop.eup %2704  ;;  %v1380_v20 = vmul.f32 1.442695, %v1361_v17  ;;  %v1374_v34 = vmul.f32 1.442695, %v1358_v27 }
 0x42b   : > { %v1344_v21 = vpop.xlane.xlu0 %1343  ;;  %v1347_v22 = vpop.xlane.xlu1 %1346  ;;  %v1405_v23 = vsel %vm1317_vm5, %v3217_v18, 0.0 }
 0x42c   : > { %v3222_v24 = vpop.eup %2706  ;;  %v1362_v25 = vsub.f32 %v3176_v43, %v1344_v21  ;;  %1406 = vadd.xlane.f32.xlu1 %v1405_v23  ;;  %2708 = vpow2.f32 %v1380_v20  ;;  %v1363_v29 = vsub.f32 %v3179_v45, %v1347_v22 }
 0x42d   : > { %v1399_v32 = vsel %vm1317_vm5, %v3222_v24, 0.0 }
 0x42e   : > { %v1382_v28 = vmul.f32 1.442695, %v1362_v25  ;;  %v1384_v38 = vmul.f32 1.442695, %v1363_v29 }
 0x42f   : > { %v1350_v30 = vpop.xlane.xlu0 %1349  ;;  %v1353_v31 = vpop.xlane.xlu1 %1352 }
 0x430   : > { %2710 = vpow2.f32 %v1382_v28  ;;  %v1365_v33 = vsub.f32 %v3186_v50, %v1353_v31  ;;  %1400 = vadd.xlane.f32.xlu1 %v1399_v32  ;;  %v1364_v35 = vsub.f32 %v3189_v52, %v1350_v30 }
 0x431   : > { %2712 = vpow2.f32 %v1378_v26 }
 0x432   : > { %v1388_v36 = vmul.f32 1.442695, %v1365_v33  ;;  %v1386_v42 = vmul.f32 1.442695, %v1364_v35 }
 0x433   : > { %v2650_v39 = vpop.permute.xlu0 %2649  ;;  %v1027_v37 = vpop.permute.xlu1 %1026 }
 0x434   : > { %v2652_v40 = vunpack.i.h.bf16 %v2650_v39  ;;  %v2651_v41 = vunpack.i.l.bf16 %v2650_v39  ;;  %2714 = vpow2.f32 %v1388_v36 }
 0x435   : > { %2716 = vpow2.f32 %v1374_v34 }
 0x436   : > { %v1054_v43 = vpack.c.bf16 %v2651_v41, %v2651_v41  ;;  %2718 = vpow2.f32 %v1384_v38  ;;  %v1053_v45 = vpack.c.bf16 %v1027_v37, %v2652_v40 }
 0x437   : > { %v3231_v44 = vpop.permute.xlu1 %2654  ;;  %2720 = vpow2.f32 %v1386_v42 }
 0x438   : > { %v2656_v46 = vunpack.i.l.bf16 %v3231_v44  ;;  %2525 = vmatprep.subr.msk.bf16.mxu0 %vm1464_vm3, %v1054_v43  ;;  %v1523_v48 = vsel %vm1464_vm3, %v1054_v43, 0  ;;  %v2657_v26 = vunpack.i.h.bf16 %v3231_v44 }
 0x439   : > { %2465 = vmatpush3.bf16.msra.mxu0 %v1523_v48  ;;  %v3236_v49 = vpop.eup %2708 }
 0x43a   : > { %v1056_v50 = vpack.c.bf16 %v2656_v46, %v2656_v46  ;;  %2466 = vmatprep.subr.bf16.mxu0 %v1053_v45  ;;  %v1411_v51 = vsel %vm1317_vm5, %v3236_v49, 0.0 }
 0x43b   : > { %v1047_v52 = vpop.permute.xlu1 %1046  ;;  %1412 = vadd.xlane.f32.xlu1 %v1411_v51 }
 0x43c   : > { %v3240_v53 = vpack.c.bf16 %v1047_v52, %v1047_v52  ;;  %2526 = vmatprep.subr.msk.bf16.mxu1 %vm1464_vm3, %v1056_v50 }
 0x43d   : > { %v3243_v54 = vpop.eup %2710  ;;  %2467 = vmatpush3.bf16.msra.mxu0 %v1053_v45 }
 0x43e   : > { %2527 = vmatprep.subr.msk.bf16.mxu0 %vm1464_vm3, %v3240_v53  ;;  %v1414_v55 = vsel %vm1317_vm5, %v3243_v54, 0.0  ;;  %v3249_v56 = vpop.eup %2712 }
 0x43f   : > { %1415 = vadd.xlane.f32.xlu0 %v1414_v55  ;;  %v1408_v58 = vsel %vm1317_vm5, %v3249_v56, 0.0 }
 0x441   : > { %v3251_v57 = vpop.eup %2714 }
 0x442   : > { %v3255_v59 = vpop.eup %2716  ;;  %v1423_v60 = vsel %vm1317_vm5, %v3251_v57, 0.0 }
 0x443   : > { %1409 = vadd.xlane.f32.xlu0 %v1408_v58  ;;  %v3259_v61 = vpop.eup %2718  ;;  %1424 = vadd.xlane.f32.xlu1 %v1423_v60  ;;  %v1402_v62 = vsel %vm1317_vm5, %v3255_v59, 0.0 }
 0x444   : > { %v3263_v63 = vpop.eup %2720  ;;  %v1417_v0 = vsel %vm1317_vm5, %v3259_v61, 0.0 }
 0x445   : > { %v1420_v2 = vsel %vm1317_vm5, %v3263_v63, 0.0 }
 0x447   : > { %1403 = vadd.xlane.f32.xlu0 %v1402_v62  ;;  %1418 = vadd.xlane.f32.xlu1 %v1417_v0 }
 0x44b   : > { %1421 = vadd.xlane.f32.xlu0 %v1420_v2  ;;  %v2684_v2 = vld [vmem:[%s3024_s16 + $0x8] sm:$0xff]  }
 0x458   : > { %2659 = vrot.lane.b32.xlu1 %v2658_v47, %s2850_s21 }
 0x461   : > { %1035 = vrot.lane.b32.xlu0 %v3135_v4, %s2851_s0  ;;  %v1580_v4 = vsel %vm1464_vm3, %v1056_v50, 0 }
 0x464   : > { %v1398_v7 = vpop.xlane.xlu0 %1397 }
 0x465   : > { %2722 = vrcp.f32 %v1398_v7  ;;  %v2685_v7 = vld [vmem:[%s3024_s16] sm:$0xff]  }
 0x468   : > { %v1392_v8 = vpop.xlane.xlu0 %1391 }
 0x469   : > { %2724 = vrcp.f32 %v1392_v8 }
 0x46c   : > { %v1395_v9 = vpop.xlane.xlu1 %1394 }
 0x46d   : > { %2726 = vrcp.f32 %v1395_v9 }
 0x472   : > { %v2723_v10 = vpop.eup %2722 }
 0x473   : > { %v1431_v13 = vmul.f32 %v2723_v10, %v3203_v1 }
 0x475   : > { %v1451_v16 = vpack.c.bf16 %v1431_v13, %v1431_v13 }
 0x476   : > { %v2725_v11 = vpop.eup %2724 }
 0x477   : > { %v1427_v14 = vmul.f32 %v2725_v11, %v3207_v3 }
 0x47a   : > { %v2727_v12 = vpop.eup %2726 }
 0x47b   : > { %v1429_v5 = vmul.f32 %v2727_v12, %v3211_v6 }
 0x47d   : > { %v1450_v15 = vpack.c.bf16 %v1429_v5, %v1427_v14 }
 0x47f   : > { %2460 = vmatprep.mubr.msk.bf16.mxu1 %vm1317_vm5, %v1450_v15 }
 0x480   : > { %2461 = vmatmul.mubr.msk.bf16.vlgmr.msra.gmra.mxu1 %vm1317_vm5, %v1451_v16 }
 0x481   : > { %2473 = vmatpush3.bf16.msra.mxu1 %v1580_v4 }
 0x4b5   : > { %v1407_v17 = vpop.xlane.xlu1 %1406 }
 0x4b9   : > { %v1401_v19 = vpop.xlane.xlu1 %1400 }
 0x4c4   : > { %v1413_v20 = vpop.xlane.xlu1 %1412 }
 0x4c8   : > { %v1416_v21 = vpop.xlane.xlu0 %1415 }
 0x4c9   : > { %2728 = vrcp.f32 %v1416_v21 }
 0x4ca   : > { %2730 = vrcp.f32 %v1413_v20 }
 0x4cc   : > { %v1410_v1 = vpop.xlane.xlu0 %1409  ;;  %v1425_v3 = vpop.xlane.xlu1 %1424 }
 0x4cd   : > { %2732 = vrcp.f32 %v1410_v1 }
 0x4ce   : > { %2734 = vrcp.f32 %v1407_v17 }
 0x4cf   : > { %2736 = vrcp.f32 %v1401_v19 }
 0x4d0   : > { %v1404_v6 = vpop.xlane.xlu0 %1403  ;;  %v1419_v22 = vpop.xlane.xlu1 %1418 }
 0x4d1   : > { %2738 = vrcp.f32 %v1404_v6 }
 0x4d2   : > { %2740 = vrcp.f32 %v1419_v22 }
 0x4d4   : > { %v1422_v23 = vpop.xlane.xlu0 %1421  ;;  %v2660_v36 = vpop.permute.xlu1 %2659 }
 0x4d5   : > { %2742 = vrcp.f32 %v1422_v23  ;;  %v2662_v44 = vunpack.i.h.bf16 %v2660_v36  ;;  %v2661_v45 = vunpack.i.l.bf16 %v2660_v36 }
 0x4d6   : > { %2744 = vrcp.f32 %v1425_v3  ;;  %v2729_v25 = vpop.eup %2728 }
 0x4d7   : > { %v2731_v27 = vpop.eup %2730  ;;  %v1443_v31 = vmul.f32 %v2729_v25, %v3243_v54  ;;  %v1057_v52 = vpack.c.bf16 %v2662_v44, %v2661_v45 }
 0x4d8   : > { %v1036_v28 = vpop.permute.xlu0 %1035  ;;  %v1441_v34 = vmul.f32 %v2731_v27, %v3236_v49 }
 0x4d9   : > { %v1055_v29 = vpack.c.bf16 %v1036_v28, %v2657_v26  ;;  %v1455_v37 = vpack.c.bf16 %v1443_v31, %v1443_v31 }
 0x4da   : > { %v2733_v30 = vpop.eup %2732 }
 0x4db   : > { %v2735_v32 = vpop.eup %2734  ;;  %2474 = vmatprep.subr.bf16.mxu1 %v1055_v29  ;;  %v1439_v33 = vmul.f32 %v2733_v30, %v3249_v56 }
 0x4dc   : > { %v2737_v35 = vpop.eup %2736  ;;  %2475 = vmatpush3.bf16.msra.mxu1 %v1055_v29  ;;  %v1437_v40 = vmul.f32 %v2735_v32, %v3217_v18 }
 0x4dd   : > { %v1454_v38 = vpack.c.bf16 %v1441_v34, %v1439_v33  ;;  %v1433_v41 = vmul.f32 %v2737_v35, %v3222_v24  ;;  %v1637_v24 = vsel %vm1464_vm3, %v3240_v53, 0  ;;  %2488 = vmatprep.subr.bf16.mxu1 %v2684_v2 }
 0x4de   : > { %v2739_v39 = vpop.eup %2738  ;;  %v1453_v49 = vpack.c.bf16 %v1437_v40, %v1437_v40 }
 0x4df   : > { %2476 = vmatprep.mubr.msk.bf16.mxu1 %vm1317_vm5, %v1454_v38  ;;  %v1435_v42 = vmul.f32 %v2739_v39, %v3255_v59  ;;  %v2741_v43 = vpop.eup %2740  ;;  %v2316_v39 = vld [vmem:[%s3471_s4] ss:$0 sm:$0xff] }
 0x4e0   : > { %2477 = vmatmul.mubr.msk.bf16.vlgmr.msra.gmra.mxu1 %vm1317_vm5, %v1455_v37  ;;  %v1445_v51 = vmul.f32 %v2741_v43, %v3259_v61  ;;  %v2752_v43 = vld [vmem:[#allocation2] sm:$0xff] }
 0x4e1   : > { %v1452_v46 = vpack.c.bf16 %v1435_v42, %v1433_v41  ;;  %2489 = vmatpush3.bf16.msra.mxu1 %v2684_v2 }
 0x4e2   : > { %v2743_v48 = vpop.eup %2742  ;;  %2490 = vmatprep.subr.bf16.mxu1 %v2685_v7 }
 0x4e3   : > { %v2745_v50 = vpop.eup %2744  ;;  %2468 = vmatprep.mubr.msk.bf16.mxu0 %vm1317_vm5, %v1452_v46  ;;  %v1447_v18 = vmul.f32 %v2743_v48, %v3263_v63  ;;  %v2753_v46 = vld [vmem:[#allocation2 + $0x10] sm:$0xff] }
 0x4e4   : > { %2469 = vmatmul.mubr.msk.bf16.vlgmr.msra.gmra.mxu0 %vm1317_vm5, %v1453_v49  ;;  %v1449_v55 = vmul.f32 %v2745_v50, %v3251_v57 }
 0x4e5   : > { %2481 = vmatpush3.bf16.msra.mxu0 %v1637_v24  ;;  %v1456_v54 = vpack.c.bf16 %v1447_v18, %v1445_v51  ;;  %2491 = vmatpush3.bf16.msra.mxu1 %v2685_v7  ;;  %v2754_v51 = vld [vmem:[#allocation2 + $0x8] sm:$0xff] }
 0x4e6   : > { %2482 = vmatprep.subr.bf16.mxu0 %v1057_v52  ;;  %v1457_v56 = vpack.c.bf16 %v1449_v55, %v1449_v55 }
 0x4e7   : > { %2484 = vmatprep.mubr.msk.bf16.mxu0 %vm1317_vm5, %v1456_v54 }
 0x4e9   : > { %2483 = vmatpush3.bf16.msra.mxu0 %v1057_v52 }
 0x4ec   : > { %2485 = vmatmul.mubr.msk.bf16.vlgmr.msra.gmra.mxu0 %vm1317_vm5, %v1457_v56 }
 0x540   : > { %v2462_v58 = vpop.f32.mrf.mxu1 }
 0x542   : > { %v1502_v59 = vpop.f32.mrf.mxu1 }
 0x544   : > { %v2463_v60 = vpop.f32.mrf.mxu1 }
 0x546   : > { %v1505_v53 = vpop.f32.mrf.mxu1 }
 0x5a0   : > { %v2478_v61 = vpop.f32.mrf.mxu1 }
 0x5a2   : > { %v1616_v62 = vpop.f32.mrf.mxu1 }
 0x5a4   : > { %v2470_v63 = vpop.f32.mrf.mxu0  ;;  %v2479_v0 = vpop.f32.mrf.mxu1 }
 0x5a5   : > { %1694 = vrot.lane.b32.xlu1 %v2470_v63, %s2852_s24 }
 0x5a6   : > { %v1559_v47 = vpop.f32.mrf.mxu0  ;;  %v1619_v10 = vpop.f32.mrf.mxu1 }
 0x5a7   : > { %v2668_v13 = vpack.i.bf16 %v1619_v10, %v1616_v62  ;;  %v2688_v10 = vld [vmem:[%s3060_s28 + $0x18] sm:$0xff]  }
 0x5a8   : > { %v2471_v57 = vpop.f32.mrf.mxu0  ;;  %2504 = vmatprep.subr.bf16.mxu1 %v2688_v10 }
 0x5a9   : > { %1706 = vrot.lane.b32.xlu1 %v2478_v61, %s2853_s2 }
 0x5aa   : > { %v1562_v8 = vpop.f32.mrf.mxu0 }
 0x5ab   : > { %v2663_v9 = vpack.i.bf16 %v1562_v8, %v1559_v47  ;;  %v2686_v8 = vld [vmem:[%s3046_s5 + $0x8] sm:$0xff]  }
 0x5ac   : > { %v2486_v11 = vpop.f32.mrf.mxu0  ;;  %2496 = vmatprep.subr.bf16.mxu0 %v2686_v8 }
 0x5ad   : > { %2664 = vrot.lane.b32.xlu0 %v2663_v9, %s2852_s24  ;;  %1718 = vrot.lane.b32.xlu1 %v2486_v11, %s2854_s29  ;;  %v2687_v9 = vld [vmem:[%s3046_s5] sm:$0xff]  }
 0x5ae   : > { %v1673_v12 = vpop.f32.mrf.mxu0  ;;  %2497 = vmatpush3.bf16.msra.mxu0 %v2686_v8 }
 0x5af   : > { %2498 = vmatprep.subr.bf16.mxu0 %v2687_v9 }
 0x5b0   : > { %v2487_v14 = vpop.f32.mrf.mxu0 }
 0x5b1   : > { %2669 = vrot.lane.b32.xlu0 %v2668_v13, %s2853_s2 }
 0x5b2   : > { %v1676_v5 = vpop.f32.mrf.mxu0  ;;  %2499 = vmatpush3.bf16.msra.mxu0 %v2687_v9 }
 0x5b3   : > { %v2673_v15 = vpack.i.bf16 %v1676_v5, %v1673_v12 }
 0x5b5   : > { %2674 = vrot.lane.b32.xlu0 %v2673_v15, %s2854_s29 }
 0x617   : > { %v1695_v16 = vpop.permute.xlu1 %1694 }
 0x618   : > { %v1725_v6 = vsel %vm1059_vm2, %v2462_v58, %v1695_v16 }
 0x61b   : > { %v1707_v17 = vpop.permute.xlu1 %1706 }
 0x61c   : > { %v1729_v23 = vsel %vm1726_vm6, %v1725_v6, %v1707_v17 }
 0x61f   : > { %v2665_v4 = vpop.permute.xlu0 %2664  ;;  %v1719_v22 = vpop.permute.xlu1 %1718 }
 0x620   : > { %v2667_v20 = vunpack.i.h.bf16 %v2665_v4  ;;  %v2666_v21 = vunpack.i.l.bf16 %v2665_v4  ;;  %v1732_v30 = vsel %vm1317_vm5, %v1729_v23, %v1719_v22 }
 0x621   : > { %v1734_v36 = vpack.c.bf16 %v1732_v30, %v1732_v30 }
 0x622   : > { %v1724_v26 = vsel %vm1059_vm2, %v1505_v53, %v2667_v20  ;;  %v1723_v27 = vsel %vm1059_vm2, %v1502_v59, %v2666_v21  ;;  %v2321_v21 = vld [vmem:[%s3472_s20] ss:$0 sm:$0xff] }
 0x623   : > { %v2670_v19 = vpop.permute.xlu0 %2669 }
 0x624   : > { %v2672_v1 = vunpack.i.h.bf16 %v2670_v19  ;;  %v2671_v3 = vunpack.i.l.bf16 %v2670_v19 }
 0x626   : > { %v1728_v31 = vsel %vm1726_vm6, %v1724_v26, %v2672_v1  ;;  %v1727_v32 = vsel %vm1726_vm6, %v1723_v27, %v2671_v3 }
 0x627   : > { %v2675_v25 = vpop.permute.xlu0 %2674 }
 0x628   : > { %v2677_v28 = vunpack.i.h.bf16 %v2675_v25  ;;  %v2676_v29 = vunpack.i.l.bf16 %v2675_v25  ;;  %v2322_v25 = vld [vmem:[%s628_s3] ss:$0 sm:$0xff] }
 0x62a   : > { %v1730_v33 = vsel %vm1317_vm5, %v1727_v32, %v2676_v29  ;;  %v1731_v34 = vsel %vm1317_vm5, %v1728_v31, %v2677_v28 }
 0x62b   : > { %v1733_v35 = vpack.c.bf16 %v1731_v34, %v1730_v33  ;;  %v2689_v33 = vld [vmem:[%s3060_s28 + $0x10] sm:$0xff]   ;;  %v2690_v34 = vld [vmem:[%s3060_s28 + $0x8] sm:$0xff]  }
 0x62d   : > { %2492 = vmatprep.mubr.msk.bf16.mxu1 %vm677_vm1, %v1733_v35  ;;  %v2691_v35 = vld [vmem:[%s3060_s28] sm:$0xff]  }
 0x62e   : > { %2493 = vmatmul.mubr.msk.bf16.vlgmr.msra.gmra.mxu1 %vm677_vm1, %v1734_v36 }
 0x62f   : > { %2505 = vmatpush3.bf16.msra.mxu1 %v2688_v10 }
 0x630   : > { %2506 = vmatprep.subr.bf16.mxu1 %v2689_v33 }
 0x633   : > { %2507 = vmatpush3.bf16.msra.mxu1 %v2689_v33 }
 0x634   : > { %2508 = vmatprep.subr.bf16.mxu1 %v2690_v34 }
 0x637   : > { %2509 = vmatpush3.bf16.msra.mxu1 %v2690_v34 }
 0x638   : > { %2510 = vmatprep.subr.bf16.mxu1 %v2691_v35 }
 0x63b   : > { %2511 = vmatpush3.bf16.msra.mxu1 %v2691_v35 }
 0x6ee   : > { %v2494_v38 = vpop.f32.mrf.mxu1 }
 0x6ef   : > { %v1807_v40 = vadd.f32 %v2494_v38, %v2316_v39  ;;  %v2323_v38 = vld [vmem:[%s636_s14] ss:$0 sm:$0xff] }
 0x6f0   : > { %v1798_v37 = vpop.f32.mrf.mxu1 }
 0x6f1   : > { %v1799_v41 = vadd.f32 %v2316_v39, %v1798_v37  ;;  %v3315_v48 = vadd.f32 %v2753_v46, %v1807_v40 }
 0x6f2   : > { %v2495_v42 = vpop.f32.mrf.mxu1 }
 0x6f3   : > { %v3313_v44 = vadd.f32 %v2752_v43, %v1799_v41  ;;  %v1823_v52 = vsel %vm677_vm1, %v3315_v48, 0.0 }
 0x6f4   : > { %v1801_v45 = vpop.f32.mrf.mxu1 }
 0x6f5   : > { %v1802_v49 = vadd.f32 %v2316_v39, %v1801_v45  ;;  %v1817_v50 = vsel %vm677_vm1, %v3313_v44, 0.0 }
 0x6f6   : > { %1818 = vadd.xlane.f32.xlu0 %v1817_v50 }
 0x6f7   : > { %v3319_v18 = vadd.f32 %v2754_v51, %v1802_v49 }
 0x6f9   : > { %v1820_v24 = vsel %vm677_vm1, %v3319_v18, 0.0 }
 0x6fa   : > { %1821 = vadd.xlane.f32.xlu1 %v1820_v24  ;;  %1824 = vadd.xlane.f32.xlu0 %v1823_v52  ;;  %v2334_v52 = vld [vmem:[%s644_s22] ss:$0 sm:$0xff] }
 0x77f   : > { %v1819_v54 = vpop.xlane.xlu0 %1818 }
 0x780   : > { %v1826_v55 = vmul.f32 0.03125, %v1819_v54 }
 0x782   : > { %v1829_v56 = vsub.f32 %v3313_v44, %v1826_v55 }
 0x783   : > { %v1822_v58 = vpop.xlane.xlu1 %1821  ;;  %v1825_v59 = vpop.xlane.xlu0 %1824 }
 0x784   : > { %v1827_v60 = vmul.f32 0.03125, %v1822_v58  ;;  %v1828_v53 = vmul.f32 0.03125, %v1825_v59  ;;  %v1832_v61 = vmul.f32 %v1829_v56, %v1829_v56 }
 0x786   : > { %v1830_v62 = vsub.f32 %v3319_v18, %v1827_v60  ;;  %v1831_v63 = vsub.f32 %v3315_v48, %v1828_v53  ;;  %v1835_v0 = vsel %vm677_vm1, %v1832_v61, 0.0 }
 0x787   : > { %1836 = vadd.xlane.f32.xlu0 %v1835_v0 }
 0x788   : > { %v1833_v2 = vmul.f32 %v1830_v62, %v1830_v62  ;;  %v1834_v47 = vmul.f32 %v1831_v63, %v1831_v63 }
 0x78a   : > { %v1838_v57 = vsel %vm677_vm1, %v1833_v2, 0.0  ;;  %v1841_v7 = vsel %vm677_vm1, %v1834_v47, 0.0 }
 0x78b   : > { %1839 = vadd.xlane.f32.xlu0 %v1838_v57  ;;  %1842 = vadd.xlane.f32.xlu1 %v1841_v7 }
 0x810   : > { %v1837_v11 = vpop.xlane.xlu0 %1836 }
 0x811   : > { %v1844_v12 = vmul.f32 0.03125, %v1837_v11 }
 0x813   : > { %v1847_v13 = vadd.f32 1e-05, %v1844_v12 }
 0x814   : > { %v1843_v14 = vpop.xlane.xlu1 %1842  ;;  %v1840_v5 = vpop.xlane.xlu0 %1839 }
 0x815   : > { %2746 = vrsqrt.f32 %v1847_v13  ;;  %v1846_v15 = vmul.f32 0.03125, %v1843_v14  ;;  %v1845_v16 = vmul.f32 0.03125, %v1840_v5 }
 0x817   : > { %v1849_v4 = vadd.f32 1e-05, %v1846_v15  ;;  %v1848_v17 = vadd.f32 1e-05, %v1845_v16 }
 0x819   : > { %2748 = vrsqrt.f32 %v1849_v4 }
 0x81a   : > { %2750 = vrsqrt.f32 %v1848_v17 }
 0x822   : > { %v2747_v19 = vpop.eup %2746 }
 0x823   : > { %v1853_v20 = vmul.f32 %v2747_v19, %v1829_v56 }
 0x825   : > { %v1862_v23 = vmul.f32 %v2321_v21, %v1853_v20 }
 0x826   : > { %v2749_v1 = vpop.eup %2748 }
 0x827   : > { %v2751_v3 = vpop.eup %2750  ;;  %v1855_v6 = vmul.f32 %v2749_v1, %v1831_v63  ;;  %v1871_v29 = vadd.f32 %v2322_v25, %v1862_v23 }
 0x828   : > { %v1854_v22 = vmul.f32 %v2751_v3, %v1830_v62 }
 0x829   : > { %v1864_v26 = vmul.f32 %v2321_v21, %v1855_v6 }
 0x82a   : > { %v1863_v27 = vmul.f32 %v2321_v21, %v1854_v22 }
 0x82b   : > { %v1873_v28 = vadd.f32 %v2322_v25, %v1864_v26 }
 0x82c   : > { %v1872_v30 = vadd.f32 %v2322_v25, %v1863_v27 }
 0x82d   : > { %v1875_v31 = vpack.c.bf16 %v1873_v28, %v1873_v28 }
 0x82e   : > { %v1874_v32 = vpack.c.bf16 %v1872_v30, %v1871_v29 }
 0x830   : > { %2500 = vmatprep.mubr.msk.bf16.mxu0 %vm677_vm1, %v1874_v32 }
 0x831   : > { %2501 = vmatmul.mubr.msk.bf16.vlgmr.msra.gmra.mxu0 %vm677_vm1, %v1875_v31 }
 0x8f1   : > { %v2502_v36 = vpop.f32.mrf.mxu0 }
 0x8f2   : > { %v1948_v37 = vadd.f32 %v2502_v36, %v2323_v38 }
 0x8f3   : > { %v1939_v39 = vpop.f32.mrf.mxu0 }
 0x8f4   : > { %v1940_v41 = vadd.f32 %v2323_v38, %v1939_v39  ;;  %v1955_v45 = vmax.f32 %v1948_v37, 0.0 }
 0x8f5   : > { %v2503_v40 = vpop.f32.mrf.mxu0 }
 0x8f6   : > { %v1953_v46 = vmax.f32 %v1940_v41, 0.0  ;;  %v1957_v51 = vpack.c.bf16 %v1955_v45, %v1955_v45 }
 0x8f7   : > { %v1942_v42 = vpop.f32.mrf.mxu0 }
 0x8f8   : > { %v1943_v43 = vadd.f32 %v2323_v38, %v1942_v42 }
 0x8fa   : > { %v1954_v49 = vmax.f32 %v1943_v43, 0.0 }
 0x8fc   : > { %v1956_v50 = vpack.c.bf16 %v1954_v49, %v1953_v46 }
 0x8fe   : > { %2512 = vmatprep.mubr.msk.bf16.mxu1 %vm1990_vm7, %v1956_v50 }
 0x8ff   : > { %2513 = vmatmul.mubr.msk.bf16.vlgmr.msra.gmra.mxu1 %vm1990_vm7, %v1957_v51 }
 0x9bf   : > { %v2514_v24 = vpop.f32.mrf.mxu1 }
 0x9c0   : > { %v2047_v54 = vadd.f32 %v2514_v24, %v3315_v48 }
 0x9c1   : > { %v2031_v55 = vpop.f32.mrf.mxu1 }
 0x9c2   : > { %v2057_v56 = vadd.f32 %v2334_v52, %v2047_v54  ;;  %v2045_v58 = vadd.f32 %v2031_v55, %v3313_v44 }
 0x9c3   : > { %v2515_v59 = vpop.f32.mrf.mxu1 }
 0x9c4   : > { %2060 = vst.msk [vmem:[#allocation2 + $0x10] sm:$0xff] %vm677_vm1, %v2057_v56  ;;  %v2055_v60 = vadd.f32 %v2334_v52, %v2045_v58 }
 0x9c5   : > { %v2034_v53 = vpop.f32.mrf.mxu1 }
 0x9c6   : > { %2058 = vst.msk [vmem:[#allocation2] sm:$0xff] %vm677_vm1, %v2055_v60  ;;  %v2046_v61 = vadd.f32 %v2034_v53, %v3319_v18  ;;  %2064 = sbr.rel (%p2335_p1) target bundleno = 2509 (0x9cd), region = 80 }
 0x9c8   : > { %v2056_v62 = vadd.f32 %v2334_v52, %v2046_v61 }
 0x9ca   : > { %2059 = vst.msk [vmem:[#allocation2 + $0x8] sm:$0xff] %vm677_vm1, %v2056_v62 }
 0x9cb   : > { %vm2065_vm8 = vcmask 253952  }
 0x9cc   : > { %2066 = vst.msk [vmem:[%s3064_s15] sm:$0x1] %vm2065_vm8, %v2055_v60 }
 0x9cd PF: > { %s3474_s22 = sld [smem:[#allocation9_spill]]  ;;  %s2080_s29 = sshll.u32 %s3064_s15, 4  ;;  %s2081_s29 = int_to_ptr.vmem [resolvable:$true] %s2080_s29 }
 0x9ce   : > { %s3476_s24 = sld [smem:[#allocation23_spill]]  ;;  %s3477_s16 = sand.u32 1, %s2823_s26  }
 0x9cf   : > { %s2068_s19 = scalar_lea.sflag [#allocation4], %s3477_s16  ;;  %s2755_s4 = scalar_lea.vmem %s2081_s29, 16 }
 0x9d0   : > { %p2756_p2 = scmp.ne.s32.totalorder %s2081_s29, %s2755_s4  ;;  %s2855_s5 = smov [#allocation3]  }
 0x9d1   : > { %s2759_s25 = sshll.u32 %s2855_s5, 4  ;;  %s2760_s25 = int_to_ptr.vmem [resolvable:$false] %s2759_s25 }
 0x9d2   : > { %p2757_p4 = pnand %p2756_p2, %p2975_p3  ;;  %s2761_s20 = scalar_lea.vmem %s2760_s25, 32 }
 0x9d3   : > { %s2336_s17 = sshll.u32 %s3474_s22, 4  ;;  %p2762_p6 = scmp.lt.s32.totalorder %s2081_s29, %s2760_s25 }
 0x9d4   : > { %s2078_s2 = scalar_lea.hbm %s3476_s24, %s2336_s17  ;;  %p2758_p5 = pneg %p2757_p4 }
 0x9d5   : > { %p2763_p7 = scmp.lt.s32.totalorder %s2761_s20, %s2755_s4 }
 0x9d7   : > { %p2764_p8 = por %p2763_p7, %p2762_p6 }
 0x9d9   : > { %p2765_p10 = pnand %p2764_p8, %p2758_p5 }
 0x9db   : > { %2768 = shalt.err (!%p2765_p10)
}
 0x9dc   : > { %s2769_s23 = scalar_lea.hbm %s2078_s2, 16  ;;  %s2773_s3 = scalar_lea.hbm %s3476_s24, 32 }
 0x9dd   : > { %p2770_p11 = scmp.ne.s32.totalorder %s2078_s2, %s2769_s23  ;;  %p2774_p0 = scmp.lt.s32.totalorder %s2078_s2, %s3476_s24 }
 0x9de   : > { %p2775_p1 = scmp.lt.s32.totalorder %s2773_s3, %s2769_s23 }
 0x9df   : > { %p2771_p12 = pnand %p2770_p11, %p2975_p3 }
 0x9e0   : > { %p2776_p2 = por %p2775_p1, %p2774_p0 }
 0x9e1   : > { %p2772_p13 = pneg %p2771_p12 }
 0x9e3   : > { %p2777_p4 = pnand %p2776_p2, %p2772_p13 }
 0x9e5   : > { %2780 = shalt.err (!%p2777_p4)
}
 0x9e6   : > { %2531 = dma.vmem_to_hbm [thread:$0]  (%p2975_p3), %s2081_s29, 16, %s2078_s2, %s2068_s19  }
 0x9e7 PF: > { %s3478_s27 = sld [smem:[#allocation12_spill]] }
 0x9e8   : > { %s3479_s18 = sld [smem:[#allocation6_spill]] }
 0x9ed   : > { %p2537_p5 = scmp.ge.s32.totalorder %s3478_s27, 2 }
 0x9ee   : > { %s2092_s17 = sand.u32 1, %s3479_s18  }
 0x9ef   : > { %p2534_p6 = pnand %p2537_p5, %p2985_p9  ;;  %s2093_s21 = scalar_lea.sflag [#allocation4], %s2092_s17 }
 0x9f1   : > { %p2535_p7 = pneg %p2534_p6 }
 0x9f3   : > { %2814 = dma.done.wait (%p2535_p7), %s2093_s21, 16  }
 0x9f4   : > { %2816 = vsyncadd (%p2535_p7), %s2093_s21, 4294967280  ;;  %s26_s15 = sadd.s32 1, %s3478_s27   ;;  %s3481_s0 = sld [smem:[#allocation7_spill]] }
 0x9f5   : > { %p23_p8 = scmp.ge.s32.totalorder %s26_s15, 6   ;;  %s3482_s27 = sld [smem:[#allocation17_spill]] }
 0x9f6   : > { %s3483_s28 = sld [smem:[#allocation10_spill]]  ;;  %s3487_s25 = smov %s2823_s26 }
 0x9f7   : > { %s3484_s29 = sld [smem:[#allocation11_spill]]  ;;  %25 = sbr.rel (!%p23_p8) target bundleno = 12 (0xc), region = 151 }
 0x9f8   : > { %s3485_s30 = sld [smem:[#allocation13_spill]] }
 0x9f9   : > { %s3486_s14 = sld [smem:[#allocation15_spill]] }
 0x9fa   : > { %s3488_s26 = smov %s3481_s0 }
 0x9fc   :  { %2097 = vsyncpa [#allocation4], 1 }
 0x9fd   :  { %2099 = vsyncpa [#allocation4 + $0x1], 1 }

</bundles_post_ra>
